<compile_context>
chip_gen: v7x
topology: tpu7x:2x2x1
jax: 0.10.0
libtpu: 0.0.40
codegen_flags: <defaults>
</compile_context>

<pallas_src>
import numpy as np
import jax
import jax.numpy as jnp
from jax import lax
from jax.experimental import pallas as pl
from jax.experimental.pallas import tpu as pltpu


# --------------------------------------------------------------------- host-side prep
def _interp_matrix(out_size, in_size):
    """1-D bilinear interpolation operator, align_corners=True (matches F.interpolate)."""
    u = np.zeros((out_size, in_size), np.float64)
    if in_size == 1 or out_size == 1:
        u[:, 0] = 1.0
        return u
    for i in range(out_size):
        src = i * (in_size - 1) / (out_size - 1)
        lo = int(np.floor(src))
        hi = min(lo + 1, in_size - 1)
        w = src - lo
        u[i, lo] += 1.0 - w
        u[i, hi] += w
    return u


def _tap_upsample_ops(ht, wt, hs, ws):
    """Window-extracted upsample operators V_k^T, shape (9, hs*ws, ht*wt).

    (y_prev @ V_k^T)[c, p] == zero-padded bilinear upsample of y_prev, sampled at the
    3x3-conv tap k window position of output pixel p (i.e. im2col of the upsampled map).
    """
    u = np.kron(_interp_matrix(ht, hs), _interp_matrix(wt, ws))      # (ht*wt, hs*ws)
    u = u.reshape(ht, wt, hs * ws)
    u = np.pad(u, ((1, 1), (1, 1), (0, 0)))                          # zero border rows
    vs = [u[di:di + ht, dj:dj + wt, :].reshape(ht * wt, hs * ws).T   # (hs*ws, ht*wt)
          for di in range(3) for dj in range(3)]
    return np.stack(vs, 0).astype(np.float32)


def _fold_branch_params(p):
    """Fold dw3x3 -> BN -> pw1x1 -> BN into W_eff (Cout, 9*Cin) and bias (Cout, 1)."""
    dw_w, dw_scale, dw_bias = p["dw_w"], p["dw_scale"], p["dw_bias"]   # (9,cin),(cin,),(cin,)
    pw_w, pw_scale, pw_bias = p["pw_w"], p["pw_scale"], p["pw_bias"]   # (cin,cout),(cout,),(cout,)
    cin, cout = pw_w.shape
    w = (dw_w[:, :, None] * dw_scale[None, :, None]
         * pw_w[None, :, :] * pw_scale[None, None, :])                 # (9, cin, cout)
    w_eff = jnp.transpose(w, (2, 0, 1)).reshape(cout, 9 * cin)         # col idx = k*cin + c
    b_eff = ((dw_bias @ pw_w) * pw_scale + pw_bias).reshape(cout, 1)
    return w_eff.astype(jnp.float32), b_eff.astype(jnp.float32)


def _im2col_nchw(x):
    """(N, C, H, W) -> (N, 9*C, H*W), row index = tap*C + channel, pixels row-major."""
    n, c, h, w = x.shape
    xp = jnp.pad(x, ((0, 0), (0, 0), (1, 1), (1, 1)))
    taps = [xp[:, :, di:di + h, dj:dj + w].reshape(n, c, h * w)
            for di in range(3) for dj in range(3)]
    return jnp.concatenate(taps, axis=1)


# ------------------------------------------------------------------------ fused kernel
def fused_iterative_aggregator(xs, params):
    """IterativeAggregator forward. xs: list of NCHW tensors, fine -> coarse order."""
    xs_rev = xs[::-1]                                     # process coarse -> fine
    nb = len(xs_rev)
    N = xs_rev[0].shape[0]
    hwc = [(x.shape[2], x.shape[3], x.shape[1]) for x in xs_rev]      # (H, W, Cin)
    cins = [c for (_, _, c) in hwc]
    ps = [h * w for (h, w, _) in hwc]
    couts = [params[i]["pw_w"].shape[1] for i in range(nb)]

    folded = [_fold_branch_params(params[i]) for i in range(nb)]
    xcols = [_im2col_nchw(x) for x in xs_rev]                          # (N, 9*Cin, P)
    vcats = [jnp.asarray(_tap_upsample_ops(hwc[i][0], hwc[i][1],
                                           hwc[i - 1][0], hwc[i - 1][1]))
             for i in range(1, nb)]                                    # (9, Pprev, Pi)

    def kernel(*refs):
        x_refs = refs[0:nb]
        wb_refs = refs[nb:3 * nb]
        v_refs = refs[3 * nb:4 * nb - 1]
        o_refs = refs[4 * nb - 1:5 * nb - 1]
        col_refs = refs[5 * nb - 1:]

        y_prev = None
        for i in range(nb):
            cin, cout, p = cins[i], couts[i], ps[i]
            w_ref, b_ref = wb_refs[2 * i], wb_refs[2 * i + 1]

            if i == 0:
                col = x_refs[0][0]                                     # (9*cin, p)
            else:
                # conv(x + up) = conv(x) + conv(up): build im2col(x) + im2col(up) in a
                # scratch via 9 sublane-aligned spatial matmuls (no in-kernel relayout).
                xcol = x_refs[i][0]                                    # (9*cin, p)
                vref = v_refs[i - 1]                                   # (9, p_prev, p)
                cref = col_refs[i - 1]                                 # (9*cin, p) scratch
                for k in range(9):
                    up_k = jnp.dot(y_prev, vref[k],
                                   preferred_element_type=jnp.float32)  # (cin, p)
                    cref[k * cin:(k + 1) * cin, :] = xcol[k * cin:(k + 1) * cin, :] + up_k
                col = cref[...]

            # Folded dw3x3+BN+pw1x1+BN as one channel-major matmul, K = 9*Cin.
            acc = jnp.dot(w_ref[...], col, preferred_element_type=jnp.float32)
            y = jnp.maximum(acc + b_ref[...], 0.0)                     # (cout, p), ReLU

            o_refs[i][0] = y
            y_prev = y

    in_specs = []
    args = []
    for i in range(nb):
        in_specs.append(pl.BlockSpec((1, 9 * cins[i], ps[i]), lambda n: (n, 0, 0)))
        args.append(xcols[i])
    for i in range(nb):
        in_specs.append(pl.BlockSpec((couts[i], 9 * cins[i]), lambda n: (0, 0)))
        in_specs.append(pl.BlockSpec((couts[i], 1), lambda n: (0, 0)))
        args += [folded[i][0], folded[i][1]]
    for i in range(1, nb):
        in_specs.append(pl.BlockSpec((9, ps[i - 1], ps[i]), lambda n: (0, 0, 0)))
        args.append(vcats[i - 1])

    out_shape = [jax.ShapeDtypeStruct((N, couts[i], ps[i]), jnp.float32)
                 for i in range(nb)]
    out_specs = [pl.BlockSpec((1, couts[i], ps[i]), lambda n: (n, 0, 0))
                 for i in range(nb)]
    scratch_shapes = [pltpu.VMEM((9 * cins[i], ps[i]), jnp.float32)
                      for i in range(1, nb)]

    outs_flat = pl.pallas_call(
        kernel,
        out_shape=out_shape,
        grid=(N,),
        in_specs=in_specs,
        out_specs=out_specs,
        scratch_shapes=scratch_shapes,
        compiler_params=pltpu.CompilerParams(dimension_semantics=("parallel",)),
    )(*args)

    outs = [outs_flat[i].reshape(N, couts[i], hwc[i][0], hwc[i][1]) for i in range(nb)]
    return outs[::-1]                                     # back to fine -> coarse order


# ---------------------------------------------------------------- pure-JAX reference
def upsample_bilinear_align_corners(x, out_h, out_w):
    """F.interpolate(mode='bilinear', align_corners=True) on NCHW tensors."""
    n, c, h, w = x.shape
    ys = jnp.linspace(0.0, h - 1.0, out_h) if (h > 1 and out_h > 1) else jnp.zeros((out_h,), jnp.float32)
    xs = jnp.linspace(0.0, w - 1.0, out_w) if (w > 1 and out_w > 1) else jnp.zeros((out_w,), jnp.float32)
    y0 = jnp.floor(ys).astype(jnp.int32)
    y1 = jnp.minimum(y0 + 1, h - 1)
    wy = ys - y0.astype(jnp.float32)
    x0 = jnp.floor(xs).astype(jnp.int32)
    x1 = jnp.minimum(x0 + 1, w - 1)
    wx = xs - x0.astype(jnp.float32)

    rows0 = jnp.take(x, y0, axis=2)
    rows1 = jnp.take(x, y1, axis=2)
    rows = rows0 * (1.0 - wy)[None, None, :, None] + rows1 * wy[None, None, :, None]
    cols0 = jnp.take(rows, x0, axis=3)
    cols1 = jnp.take(rows, x1, axis=3)
    return cols0 * (1.0 - wx)[None, None, None, :] + cols1 * wx[None, None, None, :]


def ref_project_branch(x, dw_w, dw_scale, dw_bias, pw_w, pw_scale, pw_bias):
    c = x.shape[1]
    dwk = dw_w.reshape(3, 3, 1, c)                       # HWIO, depthwise
    dw = lax.conv_general_dilated(
        x, dwk, window_strides=(1, 1), padding=((1, 1), (1, 1)),
        dimension_numbers=("NCHW", "HWIO", "NCHW"),
        feature_group_count=c)
    dw = dw * dw_scale[None, :, None, None] + dw_bias[None, :, None, None]
    pw = jnp.einsum("nchw,cd->ndhw", dw, pw_w)
    pw = pw * pw_scale[None, :, None, None] + pw_bias[None, :, None, None]
    return jnp.maximum(pw, 0.0)


def ref_iterative_aggregator(xs, params):
    xs_rev = xs[::-1]
    y_list = []
    last = None
    for i, s in enumerate(xs_rev):
        if last is not None:
            up = upsample_bilinear_align_corners(last, s.shape[2], s.shape[3])
            s = s + up
        p = params[i]
        s = ref_project_branch(s, p["dw_w"], p["dw_scale"], p["dw_bias"],
                               p["pw_w"], p["pw_scale"], p["pw_bias"])
        last = s
        y_list.append(s)
    return y_list[::-1]


# --------------------------------------------------------------------------- params
def _make_bn(key, c):
    kg, kb, km, kv = jax.random.split(key, 4)
    gamma = 1.0 + 0.1 * jax.random.normal(kg, (c,), jnp.float32)
    beta = 0.1 * jax.random.normal(kb, (c,), jnp.float32)
    mean = 0.1 * jax.random.normal(km, (c,), jnp.float32)
    var = jnp.abs(jax.random.normal(kv, (c,), jnp.float32)) + 0.5
    eps = 1e-5
    scale = gamma / jnp.sqrt(var + eps)
    bias = beta - mean * scale
    return scale, bias


def make_params(key, in_channels):
    """Build project-branch params in reversed (coarse->fine) channel order."""
    rev_c = in_channels[::-1]
    num = len(rev_c)
    params = []
    keys = jax.random.split(key, num)
    for i in range(num):
        cin = rev_c[i]
        cout = rev_c[i + 1] if i != num - 1 else rev_c[i]
        k = jax.random.split(keys[i], 4)
        dw_w = 0.2 * jax.random.normal(k[0], (9, cin), jnp.float32)    # taps row-major
        pw_w = 0.2 * jax.random.normal(k[1], (cin, cout), jnp.float32)
        dw_scale, dw_bias = _make_bn(k[2], cin)
        pw_scale, pw_bias = _make_bn(k[3], cout)
        params.append(dict(dw_w=dw_w, dw_scale=dw_scale, dw_bias=dw_bias,
                           pw_w=pw_w, pw_scale=pw_scale, pw_bias=pw_bias))
    return params


# ----------------------------------------------------------------------------- main
if __name__ == "__main__":
    key = jax.random.PRNGKey(0)
    k_in, k_par = jax.random.split(key)

    # PyTorch module: IterativeAggregator(in_channels=[8, 16, 32]), NCHW inputs.
    in_channels = [8, 16, 32]             # fine -> coarse
    spatial = [(16, 16), (8, 8), (4, 4)]  # fine -> coarse
    N = 2

    in_keys = jax.random.split(k_in, len(in_channels))
    xs = [jax.random.normal(in_keys[i], (N, c, h, w), jnp.float32)     # NCHW
          for i, (c, (h, w)) in enumerate(zip(in_channels, spatial))]

    params = make_params(k_par, in_channels)

    outs = fused_iterative_aggregator(xs, params)
    outs = jax.block_until_ready(outs)

    refs = ref_iterative_aggregator(xs, params)
    refs = jax.block_until_ready(refs)

    for o, r in zip(outs, refs):
        np.testing.assert_allclose(np.asarray(o), np.asarray(r), rtol=1e-4, atol=1e-4)

    print("KERNEL_OK")
</pallas_src>

<mosaic_0001>
module attributes {stable_mosaic.version = 11 : i64} {
  func.func @kernel(%arg0: i32, %arg1: memref<1x288x16xf32, #tpu.memory_space<vmem>>, %arg2: memref<1x144x64xf32, #tpu.memory_space<vmem>>, %arg3: memref<1x72x256xf32, #tpu.memory_space<vmem>>, %arg4: memref<16x288xf32, #tpu.memory_space<vmem>>, %arg5: memref<16x1xf32, #tpu.memory_space<vmem>>, %arg6: memref<8x144xf32, #tpu.memory_space<vmem>>, %arg7: memref<8x1xf32, #tpu.memory_space<vmem>>, %arg8: memref<8x72xf32, #tpu.memory_space<vmem>>, %arg9: memref<8x1xf32, #tpu.memory_space<vmem>>, %arg10: memref<9x16x64xf32, #tpu.memory_space<vmem>>, %arg11: memref<9x64x256xf32, #tpu.memory_space<vmem>>, %arg12: memref<1x16x16xf32, #tpu.memory_space<vmem>>, %arg13: memref<1x8x64xf32, #tpu.memory_space<vmem>>, %arg14: memref<1x8x256xf32, #tpu.memory_space<vmem>>, %arg15: memref<144x64xf32, #tpu.memory_space<vmem>>, %arg16: memref<72x256xf32, #tpu.memory_space<vmem>>) attributes {dimension_semantics = [#tpu.dimension_semantics<parallel>], iteration_bounds = array<i64: 2>, scalar_prefetch = 0 : i64, scratch_operands = 2 : i64, tpu.core_type = #tpu.core_type<tc>, window_params = [{transform_indices = @transform_0, window_bounds = array<i64: 1, 288, 16>}, {transform_indices = @transform_1, window_bounds = array<i64: 1, 144, 64>}, {transform_indices = @transform_2, window_bounds = array<i64: 1, 72, 256>}, {pipeline_mode = #tpu.pipeline_mode<synchronous>, transform_indices = @transform_3, window_bounds = array<i64: 16, 288>}, {pipeline_mode = #tpu.pipeline_mode<synchronous>, transform_indices = @transform_4, window_bounds = array<i64: 16, 1>}, {pipeline_mode = #tpu.pipeline_mode<synchronous>, transform_indices = @transform_5, window_bounds = array<i64: 8, 144>}, {pipeline_mode = #tpu.pipeline_mode<synchronous>, transform_indices = @transform_6, window_bounds = array<i64: 8, 1>}, {pipeline_mode = #tpu.pipeline_mode<synchronous>, transform_indices = @transform_7, window_bounds = array<i64: 8, 72>}, {pipeline_mode = #tpu.pipeline_mode<synchronous>, transform_indices = @transform_8, window_bounds = array<i64: 8, 1>}, {pipeline_mode = #tpu.pipeline_mode<synchronous>, transform_indices = @transform_9, window_bounds = array<i64: 9, 16, 64>}, {pipeline_mode = #tpu.pipeline_mode<synchronous>, transform_indices = @transform_10, window_bounds = array<i64: 9, 64, 256>}, {transform_indices = @transform_11, window_bounds = array<i64: 1, 16, 16>}, {transform_indices = @transform_12, window_bounds = array<i64: 1, 8, 64>}, {transform_indices = @transform_13, window_bounds = array<i64: 1, 8, 256>}]} {
    %c0 = arith.constant 0 : index
    %c0_0 = arith.constant 0 : index
    %c0_1 = arith.constant 0 : index
    %0 = vector.load %arg1[%c0, %c0_0, %c0_1] : memref<1x288x16xf32, #tpu.memory_space<vmem>>, vector<1x288x16xf32>
    %1 = vector.shape_cast %0 : vector<1x288x16xf32> to vector<288x16xf32>
    %c0_2 = arith.constant 0 : index
    %c0_3 = arith.constant 0 : index
    %2 = vector.load %arg4[%c0_2, %c0_3] : memref<16x288xf32, #tpu.memory_space<vmem>>, vector<16x288xf32>
    %cst = arith.constant dense<0.000000e+00> : vector<16x16xf32>
    %3 = tpu.matmul %2, %1, %cst {dimension_numbers = #tpu.dot_dimension_numbers<[1], [0], [0], [1], [0, 0, 1, 1], [], []>} : vector<16x288xf32>, vector<288x16xf32>, vector<16x16xf32> -> vector<16x16xf32>
    %c0_4 = arith.constant 0 : index
    %c0_5 = arith.constant 0 : index
    %4 = vector.load %arg5[%c0_4, %c0_5] : memref<16x1xf32, #tpu.memory_space<vmem>>, vector<16x1xf32>
    %5 = vector.broadcast %4 : vector<16x1xf32> to vector<16x16xf32>
    %6 = arith.addf %3, %5 : vector<16x16xf32>
    %cst_6 = arith.constant 0.000000e+00 : f32
    %7 = vector.broadcast %cst_6 : f32 to vector<16x16xf32>
    %8 = arith.maximumf %6, %7 : vector<16x16xf32>
    %c0_7 = arith.constant 0 : index
    %c0_8 = arith.constant 0 : index
    %c0_9 = arith.constant 0 : index
    %9 = vector.load %arg12[%c0_7, %c0_8, %c0_9] : memref<1x16x16xf32, #tpu.memory_space<vmem>>, vector<1x16x16xf32>
    %10 = vector.shape_cast %9 : vector<1x16x16xf32> to vector<16x16xf32>
    %11 = vector.shape_cast %8 : vector<16x16xf32> to vector<1x16x16xf32>
    tpu.vector_store %arg12[%c0_7, %c0_8, %c0_9], %11 {strides = array<i32>} : memref<1x16x16xf32, #tpu.memory_space<vmem>>, vector<1x16x16xf32>,
    %c0_10 = arith.constant 0 : index
    %c0_11 = arith.constant 0 : index
    %c0_12 = arith.constant 0 : index
    %12 = vector.load %arg2[%c0_10, %c0_11, %c0_12] : memref<1x144x64xf32, #tpu.memory_space<vmem>>, vector<1x144x64xf32>
    %13 = vector.shape_cast %12 : vector<1x144x64xf32> to vector<144x64xf32>
    %c0_13 = arith.constant 0 : index
    %c0_14 = arith.constant 0 : index
    %c0_15 = arith.constant 0 : index
    %14 = vector.load %arg10[%c0_13, %c0_14, %c0_15] : memref<9x16x64xf32, #tpu.memory_space<vmem>>, vector<1x16x64xf32>
    %15 = vector.shape_cast %14 : vector<1x16x64xf32> to vector<16x64xf32>
    %cst_16 = arith.constant dense<0.000000e+00> : vector<16x64xf32>
    %16 = tpu.matmul %8, %15, %cst_16 {dimension_numbers = #tpu.dot_dimension_numbers<[1], [0], [0], [1], [0, 0, 1, 1], [], []>} : vector<16x16xf32>, vector<16x64xf32>, vector<16x64xf32> -> vector<16x64xf32>
    %17 = vector.extract_strided_slice %13 {offsets = [0, 0], sizes = [16, 64], strides = [1, 1]} : vector<144x64xf32> to vector<16x64xf32>
    %18 = arith.addf %17, %16 : vector<16x64xf32>
    %c0_17 = arith.constant 0 : index
    %c0_18 = arith.constant 0 : index
    %19 = vector.load %arg15[%c0_17, %c0_18] : memref<144x64xf32, #tpu.memory_space<vmem>>, vector<16x64xf32>
    tpu.vector_store %arg15[%c0_17, %c0_18], %18 {strides = array<i32>} : memref<144x64xf32, #tpu.memory_space<vmem>>, vector<16x64xf32>,
    %c1 = arith.constant 1 : index
    %c0_19 = arith.constant 0 : index
    %c0_20 = arith.constant 0 : index
    %20 = vector.load %arg10[%c1, %c0_19, %c0_20] : memref<9x16x64xf32, #tpu.memory_space<vmem>>, vector<1x16x64xf32>
    %21 = vector.shape_cast %20 : vector<1x16x64xf32> to vector<16x64xf32>
    %cst_21 = arith.constant dense<0.000000e+00> : vector<16x64xf32>
    %22 = tpu.matmul %8, %21, %cst_21 {dimension_numbers = #tpu.dot_dimension_numbers<[1], [0], [0], [1], [0, 0, 1, 1], [], []>} : vector<16x16xf32>, vector<16x64xf32>, vector<16x64xf32> -> vector<16x64xf32>
    %23 = vector.extract_strided_slice %13 {offsets = [16, 0], sizes = [16, 64], strides = [1, 1]} : vector<144x64xf32> to vector<16x64xf32>
    %24 = arith.addf %23, %22 : vector<16x64xf32>
    %c16 = arith.constant 16 : index
    %c0_22 = arith.constant 0 : index
    %25 = vector.load %arg15[%c16, %c0_22] : memref<144x64xf32, #tpu.memory_space<vmem>>, vector<16x64xf32>
    tpu.vector_store %arg15[%c16, %c0_22], %24 {strides = array<i32>} : memref<144x64xf32, #tpu.memory_space<vmem>>, vector<16x64xf32>,
    %c2 = arith.constant 2 : index
    %c0_23 = arith.constant 0 : index
    %c0_24 = arith.constant 0 : index
    %26 = vector.load %arg10[%c2, %c0_23, %c0_24] : memref<9x16x64xf32, #tpu.memory_space<vmem>>, vector<1x16x64xf32>
    %27 = vector.shape_cast %26 : vector<1x16x64xf32> to vector<16x64xf32>
    %cst_25 = arith.constant dense<0.000000e+00> : vector<16x64xf32>
    %28 = tpu.matmul %8, %27, %cst_25 {dimension_numbers = #tpu.dot_dimension_numbers<[1], [0], [0], [1], [0, 0, 1, 1], [], []>} : vector<16x16xf32>, vector<16x64xf32>, vector<16x64xf32> -> vector<16x64xf32>
    %29 = vector.extract_strided_slice %13 {offsets = [32, 0], sizes = [16, 64], strides = [1, 1]} : vector<144x64xf32> to vector<16x64xf32>
    %30 = arith.addf %29, %28 : vector<16x64xf32>
    %c32 = arith.constant 32 : index
    %c0_26 = arith.constant 0 : index
    %31 = vector.load %arg15[%c32, %c0_26] : memref<144x64xf32, #tpu.memory_space<vmem>>, vector<16x64xf32>
    tpu.vector_store %arg15[%c32, %c0_26], %30 {strides = array<i32>} : memref<144x64xf32, #tpu.memory_space<vmem>>, vector<16x64xf32>,
    %c3 = arith.constant 3 : index
    %c0_27 = arith.constant 0 : index
    %c0_28 = arith.constant 0 : index
    %32 = vector.load %arg10[%c3, %c0_27, %c0_28] : memref<9x16x64xf32, #tpu.memory_space<vmem>>, vector<1x16x64xf32>
    %33 = vector.shape_cast %32 : vector<1x16x64xf32> to vector<16x64xf32>
    %cst_29 = arith.constant dense<0.000000e+00> : vector<16x64xf32>
    %34 = tpu.matmul %8, %33, %cst_29 {dimension_numbers = #tpu.dot_dimension_numbers<[1], [0], [0], [1], [0, 0, 1, 1], [], []>} : vector<16x16xf32>, vector<16x64xf32>, vector<16x64xf32> -> vector<16x64xf32>
    %35 = vector.extract_strided_slice %13 {offsets = [48, 0], sizes = [16, 64], strides = [1, 1]} : vector<144x64xf32> to vector<16x64xf32>
    %36 = arith.addf %35, %34 : vector<16x64xf32>
    %c48 = arith.constant 48 : index
    %c0_30 = arith.constant 0 : index
    %37 = vector.load %arg15[%c48, %c0_30] : memref<144x64xf32, #tpu.memory_space<vmem>>, vector<16x64xf32>
    tpu.vector_store %arg15[%c48, %c0_30], %36 {strides = array<i32>} : memref<144x64xf32, #tpu.memory_space<vmem>>, vector<16x64xf32>,
    %c4 = arith.constant 4 : index
    %c0_31 = arith.constant 0 : index
    %c0_32 = arith.constant 0 : index
    %38 = vector.load %arg10[%c4, %c0_31, %c0_32] : memref<9x16x64xf32, #tpu.memory_space<vmem>>, vector<1x16x64xf32>
    %39 = vector.shape_cast %38 : vector<1x16x64xf32> to vector<16x64xf32>
    %cst_33 = arith.constant dense<0.000000e+00> : vector<16x64xf32>
    %40 = tpu.matmul %8, %39, %cst_33 {dimension_numbers = #tpu.dot_dimension_numbers<[1], [0], [0], [1], [0, 0, 1, 1], [], []>} : vector<16x16xf32>, vector<16x64xf32>, vector<16x64xf32> -> vector<16x64xf32>
    %41 = vector.extract_strided_slice %13 {offsets = [64, 0], sizes = [16, 64], strides = [1, 1]} : vector<144x64xf32> to vector<16x64xf32>
    %42 = arith.addf %41, %40 : vector<16x64xf32>
    %c64 = arith.constant 64 : index
    %c0_34 = arith.constant 0 : index
    %43 = vector.load %arg15[%c64, %c0_34] : memref<144x64xf32, #tpu.memory_space<vmem>>, vector<16x64xf32>
    tpu.vector_store %arg15[%c64, %c0_34], %42 {strides = array<i32>} : memref<144x64xf32, #tpu.memory_space<vmem>>, vector<16x64xf32>,
    %c5 = arith.constant 5 : index
    %c0_35 = arith.constant 0 : index
    %c0_36 = arith.constant 0 : index
    %44 = vector.load %arg10[%c5, %c0_35, %c0_36] : memref<9x16x64xf32, #tpu.memory_space<vmem>>, vector<1x16x64xf32>
    %45 = vector.shape_cast %44 : vector<1x16x64xf32> to vector<16x64xf32>
    %cst_37 = arith.constant dense<0.000000e+00> : vector<16x64xf32>
    %46 = tpu.matmul %8, %45, %cst_37 {dimension_numbers = #tpu.dot_dimension_numbers<[1], [0], [0], [1], [0, 0, 1, 1], [], []>} : vector<16x16xf32>, vector<16x64xf32>, vector<16x64xf32> -> vector<16x64xf32>
    %47 = vector.extract_strided_slice %13 {offsets = [80, 0], sizes = [16, 64], strides = [1, 1]} : vector<144x64xf32> to vector<16x64xf32>
    %48 = arith.addf %47, %46 : vector<16x64xf32>
    %c80 = arith.constant 80 : index
    %c0_38 = arith.constant 0 : index
    %49 = vector.load %arg15[%c80, %c0_38] : memref<144x64xf32, #tpu.memory_space<vmem>>, vector<16x64xf32>
    tpu.vector_store %arg15[%c80, %c0_38], %48 {strides = array<i32>} : memref<144x64xf32, #tpu.memory_space<vmem>>, vector<16x64xf32>,
    %c6 = arith.constant 6 : index
    %c0_39 = arith.constant 0 : index
    %c0_40 = arith.constant 0 : index
    %50 = vector.load %arg10[%c6, %c0_39, %c0_40] : memref<9x16x64xf32, #tpu.memory_space<vmem>>, vector<1x16x64xf32>
    %51 = vector.shape_cast %50 : vector<1x16x64xf32> to vector<16x64xf32>
    %cst_41 = arith.constant dense<0.000000e+00> : vector<16x64xf32>
    %52 = tpu.matmul %8, %51, %cst_41 {dimension_numbers = #tpu.dot_dimension_numbers<[1], [0], [0], [1], [0, 0, 1, 1], [], []>} : vector<16x16xf32>, vector<16x64xf32>, vector<16x64xf32> -> vector<16x64xf32>
    %53 = vector.extract_strided_slice %13 {offsets = [96, 0], sizes = [16, 64], strides = [1, 1]} : vector<144x64xf32> to vector<16x64xf32>
    %54 = arith.addf %53, %52 : vector<16x64xf32>
    %c96 = arith.constant 96 : index
    %c0_42 = arith.constant 0 : index
    %55 = vector.load %arg15[%c96, %c0_42] : memref<144x64xf32, #tpu.memory_space<vmem>>, vector<16x64xf32>
    tpu.vector_store %arg15[%c96, %c0_42], %54 {strides = array<i32>} : memref<144x64xf32, #tpu.memory_space<vmem>>, vector<16x64xf32>,
    %c7 = arith.constant 7 : index
    %c0_43 = arith.constant 0 : index
    %c0_44 = arith.constant 0 : index
    %56 = vector.load %arg10[%c7, %c0_43, %c0_44] : memref<9x16x64xf32, #tpu.memory_space<vmem>>, vector<1x16x64xf32>
    %57 = vector.shape_cast %56 : vector<1x16x64xf32> to vector<16x64xf32>
    %cst_45 = arith.constant dense<0.000000e+00> : vector<16x64xf32>
    %58 = tpu.matmul %8, %57, %cst_45 {dimension_numbers = #tpu.dot_dimension_numbers<[1], [0], [0], [1], [0, 0, 1, 1], [], []>} : vector<16x16xf32>, vector<16x64xf32>, vector<16x64xf32> -> vector<16x64xf32>
    %59 = vector.extract_strided_slice %13 {offsets = [112, 0], sizes = [16, 64], strides = [1, 1]} : vector<144x64xf32> to vector<16x64xf32>
    %60 = arith.addf %59, %58 : vector<16x64xf32>
    %c112 = arith.constant 112 : index
    %c0_46 = arith.constant 0 : index
    %61 = vector.load %arg15[%c112, %c0_46] : memref<144x64xf32, #tpu.memory_space<vmem>>, vector<16x64xf32>
    tpu.vector_store %arg15[%c112, %c0_46], %60 {strides = array<i32>} : memref<144x64xf32, #tpu.memory_space<vmem>>, vector<16x64xf32>,
    %c8 = arith.constant 8 : index
    %c0_47 = arith.constant 0 : index
    %c0_48 = arith.constant 0 : index
    %62 = vector.load %arg10[%c8, %c0_47, %c0_48] : memref<9x16x64xf32, #tpu.memory_space<vmem>>, vector<1x16x64xf32>
    %63 = vector.shape_cast %62 : vector<1x16x64xf32> to vector<16x64xf32>
    %cst_49 = arith.constant dense<0.000000e+00> : vector<16x64xf32>
    %64 = tpu.matmul %8, %63, %cst_49 {dimension_numbers = #tpu.dot_dimension_numbers<[1], [0], [0], [1], [0, 0, 1, 1], [], []>} : vector<16x16xf32>, vector<16x64xf32>, vector<16x64xf32> -> vector<16x64xf32>
    %65 = vector.extract_strided_slice %13 {offsets = [128, 0], sizes = [16, 64], strides = [1, 1]} : vector<144x64xf32> to vector<16x64xf32>
    %66 = arith.addf %65, %64 : vector<16x64xf32>
    %c128 = arith.constant 128 : index
    %c0_50 = arith.constant 0 : index
    %67 = vector.load %arg15[%c128, %c0_50] : memref<144x64xf32, #tpu.memory_space<vmem>>, vector<16x64xf32>
    tpu.vector_store %arg15[%c128, %c0_50], %66 {strides = array<i32>} : memref<144x64xf32, #tpu.memory_space<vmem>>, vector<16x64xf32>,
    %c0_51 = arith.constant 0 : index
    %c0_52 = arith.constant 0 : index
    %68 = vector.load %arg15[%c0_51, %c0_52] : memref<144x64xf32, #tpu.memory_space<vmem>>, vector<144x64xf32>
    %c0_53 = arith.constant 0 : index
    %c0_54 = arith.constant 0 : index
    %69 = vector.load %arg6[%c0_53, %c0_54] : memref<8x144xf32, #tpu.memory_space<vmem>>, vector<8x144xf32>
    %cst_55 = arith.constant dense<0.000000e+00> : vector<8x64xf32>
    %70 = tpu.matmul %69, %68, %cst_55 {dimension_numbers = #tpu.dot_dimension_numbers<[1], [0], [0], [1], [0, 0, 1, 1], [], []>} : vector<8x144xf32>, vector<144x64xf32>, vector<8x64xf32> -> vector<8x64xf32>
    %c0_56 = arith.constant 0 : index
    %c0_57 = arith.constant 0 : index
    %71 = vector.load %arg7[%c0_56, %c0_57] : memref<8x1xf32, #tpu.memory_space<vmem>>, vector<8x1xf32>
    %72 = vector.broadcast %71 : vector<8x1xf32> to vector<8x64xf32>
    %73 = arith.addf %70, %72 : vector<8x64xf32>
    %cst_58 = arith.constant 0.000000e+00 : f32
    %74 = vector.broadcast %cst_58 : f32 to vector<8x64xf32>
    %75 = arith.maximumf %73, %74 : vector<8x64xf32>
    %c0_59 = arith.constant 0 : index
    %c0_60 = arith.constant 0 : index
    %c0_61 = arith.constant 0 : index
    %76 = vector.load %arg13[%c0_59, %c0_60, %c0_61] : memref<1x8x64xf32, #tpu.memory_space<vmem>>, vector<1x8x64xf32>
    %77 = vector.shape_cast %76 : vector<1x8x64xf32> to vector<8x64xf32>
    %78 = vector.shape_cast %75 : vector<8x64xf32> to vector<1x8x64xf32>
    tpu.vector_store %arg13[%c0_59, %c0_60, %c0_61], %78 {strides = array<i32>} : memref<1x8x64xf32, #tpu.memory_space<vmem>>, vector<1x8x64xf32>,
    %c0_62 = arith.constant 0 : index
    %c0_63 = arith.constant 0 : index
    %c0_64 = arith.constant 0 : index
    %79 = vector.load %arg3[%c0_62, %c0_63, %c0_64] : memref<1x72x256xf32, #tpu.memory_space<vmem>>, vector<1x72x256xf32>
    %80 = vector.shape_cast %79 : vector<1x72x256xf32> to vector<72x256xf32>
    %c0_65 = arith.constant 0 : index
    %c0_66 = arith.constant 0 : index
    %c0_67 = arith.constant 0 : index
    %81 = vector.load %arg11[%c0_65, %c0_66, %c0_67] : memref<9x64x256xf32, #tpu.memory_space<vmem>>, vector<1x64x256xf32>
    %82 = vector.shape_cast %81 : vector<1x64x256xf32> to vector<64x256xf32>
    %cst_68 = arith.constant dense<0.000000e+00> : vector<8x256xf32>
    %83 = tpu.matmul %75, %82, %cst_68 {dimension_numbers = #tpu.dot_dimension_numbers<[1], [0], [0], [1], [0, 0, 1, 1], [], []>} : vector<8x64xf32>, vector<64x256xf32>, vector<8x256xf32> -> vector<8x256xf32>
    %84 = vector.extract_strided_slice %80 {offsets = [0, 0], sizes = [8, 256], strides = [1, 1]} : vector<72x256xf32> to vector<8x256xf32>
    %85 = arith.addf %84, %83 : vector<8x256xf32>
    %c0_69 = arith.constant 0 : index
    %c0_70 = arith.constant 0 : index
    %86 = vector.load %arg16[%c0_69, %c0_70] : memref<72x256xf32, #tpu.memory_space<vmem>>, vector<8x256xf32>
    tpu.vector_store %arg16[%c0_69, %c0_70], %85 {strides = array<i32>} : memref<72x256xf32, #tpu.memory_space<vmem>>, vector<8x256xf32>,
    %c1_71 = arith.constant 1 : index
    %c0_72 = arith.constant 0 : index
    %c0_73 = arith.constant 0 : index
    %87 = vector.load %arg11[%c1_71, %c0_72, %c0_73] : memref<9x64x256xf32, #tpu.memory_space<vmem>>, vector<1x64x256xf32>
    %88 = vector.shape_cast %87 : vector<1x64x256xf32> to vector<64x256xf32>
    %cst_74 = arith.constant dense<0.000000e+00> : vector<8x256xf32>
    %89 = tpu.matmul %75, %88, %cst_74 {dimension_numbers = #tpu.dot_dimension_numbers<[1], [0], [0], [1], [0, 0, 1, 1], [], []>} : vector<8x64xf32>, vector<64x256xf32>, vector<8x256xf32> -> vector<8x256xf32>
    %90 = vector.extract_strided_slice %80 {offsets = [8, 0], sizes = [8, 256], strides = [1, 1]} : vector<72x256xf32> to vector<8x256xf32>
    %91 = arith.addf %90, %89 : vector<8x256xf32>
    %c8_75 = arith.constant 8 : index
    %c0_76 = arith.constant 0 : index
    %92 = vector.load %arg16[%c8_75, %c0_76] : memref<72x256xf32, #tpu.memory_space<vmem>>, vector<8x256xf32>
    tpu.vector_store %arg16[%c8_75, %c0_76], %91 {strides = array<i32>} : memref<72x256xf32, #tpu.memory_space<vmem>>, vector<8x256xf32>,
    %c2_77 = arith.constant 2 : index
    %c0_78 = arith.constant 0 : index
    %c0_79 = arith.constant 0 : index
    %93 = vector.load %arg11[%c2_77, %c0_78, %c0_79] : memref<9x64x256xf32, #tpu.memory_space<vmem>>, vector<1x64x256xf32>
    %94 = vector.shape_cast %93 : vector<1x64x256xf32> to vector<64x256xf32>
    %cst_80 = arith.constant dense<0.000000e+00> : vector<8x256xf32>
    %95 = tpu.matmul %75, %94, %cst_80 {dimension_numbers = #tpu.dot_dimension_numbers<[1], [0], [0], [1], [0, 0, 1, 1], [], []>} : vector<8x64xf32>, vector<64x256xf32>, vector<8x256xf32> -> vector<8x256xf32>
    %96 = vector.extract_strided_slice %80 {offsets = [16, 0], sizes = [8, 256], strides = [1, 1]} : vector<72x256xf32> to vector<8x256xf32>
    %97 = arith.addf %96, %95 : vector<8x256xf32>
    %c16_81 = arith.constant 16 : index
    %c0_82 = arith.constant 0 : index
    %98 = vector.load %arg16[%c16_81, %c0_82] : memref<72x256xf32, #tpu.memory_space<vmem>>, vector<8x256xf32>
    tpu.vector_store %arg16[%c16_81, %c0_82], %97 {strides = array<i32>} : memref<72x256xf32, #tpu.memory_space<vmem>>, vector<8x256xf32>,
    %c3_83 = arith.constant 3 : index
    %c0_84 = arith.constant 0 : index
    %c0_85 = arith.constant 0 : index
    %99 = vector.load %arg11[%c3_83, %c0_84, %c0_85] : memref<9x64x256xf32, #tpu.memory_space<vmem>>, vector<1x64x256xf32>
    %100 = vector.shape_cast %99 : vector<1x64x256xf32> to vector<64x256xf32>
    %cst_86 = arith.constant dense<0.000000e+00> : vector<8x256xf32>
    %101 = tpu.matmul %75, %100, %cst_86 {dimension_numbers = #tpu.dot_dimension_numbers<[1], [0], [0], [1], [0, 0, 1, 1], [], []>} : vector<8x64xf32>, vector<64x256xf32>, vector<8x256xf32> -> vector<8x256xf32>
    %102 = vector.extract_strided_slice %80 {offsets = [24, 0], sizes = [8, 256], strides = [1, 1]} : vector<72x256xf32> to vector<8x256xf32>
    %103 = arith.addf %102, %101 : vector<8x256xf32>
    %c24 = arith.constant 24 : index
    %c0_87 = arith.constant 0 : index
    %104 = vector.load %arg16[%c24, %c0_87] : memref<72x256xf32, #tpu.memory_space<vmem>>, vector<8x256xf32>
    tpu.vector_store %arg16[%c24, %c0_87], %103 {strides = array<i32>} : memref<72x256xf32, #tpu.memory_space<vmem>>, vector<8x256xf32>,
    %c4_88 = arith.constant 4 : index
    %c0_89 = arith.constant 0 : index
    %c0_90 = arith.constant 0 : index
    %105 = vector.load %arg11[%c4_88, %c0_89, %c0_90] : memref<9x64x256xf32, #tpu.memory_space<vmem>>, vector<1x64x256xf32>
    %106 = vector.shape_cast %105 : vector<1x64x256xf32> to vector<64x256xf32>
    %cst_91 = arith.constant dense<0.000000e+00> : vector<8x256xf32>
    %107 = tpu.matmul %75, %106, %cst_91 {dimension_numbers = #tpu.dot_dimension_numbers<[1], [0], [0], [1], [0, 0, 1, 1], [], []>} : vector<8x64xf32>, vector<64x256xf32>, vector<8x256xf32> -> vector<8x256xf32>
    %108 = vector.extract_strided_slice %80 {offsets = [32, 0], sizes = [8, 256], strides = [1, 1]} : vector<72x256xf32> to vector<8x256xf32>
    %109 = arith.addf %108, %107 : vector<8x256xf32>
    %c32_92 = arith.constant 32 : index
    %c0_93 = arith.constant 0 : index
    %110 = vector.load %arg16[%c32_92, %c0_93] : memref<72x256xf32, #tpu.memory_space<vmem>>, vector<8x256xf32>
    tpu.vector_store %arg16[%c32_92, %c0_93], %109 {strides = array<i32>} : memref<72x256xf32, #tpu.memory_space<vmem>>, vector<8x256xf32>,
    %c5_94 = arith.constant 5 : index
    %c0_95 = arith.constant 0 : index
    %c0_96 = arith.constant 0 : index
    %111 = vector.load %arg11[%c5_94, %c0_95, %c0_96] : memref<9x64x256xf32, #tpu.memory_space<vmem>>, vector<1x64x256xf32>
    %112 = vector.shape_cast %111 : vector<1x64x256xf32> to vector<64x256xf32>
    %cst_97 = arith.constant dense<0.000000e+00> : vector<8x256xf32>
    %113 = tpu.matmul %75, %112, %cst_97 {dimension_numbers = #tpu.dot_dimension_numbers<[1], [0], [0], [1], [0, 0, 1, 1], [], []>} : vector<8x64xf32>, vector<64x256xf32>, vector<8x256xf32> -> vector<8x256xf32>
    %114 = vector.extract_strided_slice %80 {offsets = [40, 0], sizes = [8, 256], strides = [1, 1]} : vector<72x256xf32> to vector<8x256xf32>
    %115 = arith.addf %114, %113 : vector<8x256xf32>
    %c40 = arith.constant 40 : index
    %c0_98 = arith.constant 0 : index
    %116 = vector.load %arg16[%c40, %c0_98] : memref<72x256xf32, #tpu.memory_space<vmem>>, vector<8x256xf32>
    tpu.vector_store %arg16[%c40, %c0_98], %115 {strides = array<i32>} : memref<72x256xf32, #tpu.memory_space<vmem>>, vector<8x256xf32>,
    %c6_99 = arith.constant 6 : index
    %c0_100 = arith.constant 0 : index
    %c0_101 = arith.constant 0 : index
    %117 = vector.load %arg11[%c6_99, %c0_100, %c0_101] : memref<9x64x256xf32, #tpu.memory_space<vmem>>, vector<1x64x256xf32>
    %118 = vector.shape_cast %117 : vector<1x64x256xf32> to vector<64x256xf32>
    %cst_102 = arith.constant dense<0.000000e+00> : vector<8x256xf32>
    %119 = tpu.matmul %75, %118, %cst_102 {dimension_numbers = #tpu.dot_dimension_numbers<[1], [0], [0], [1], [0, 0, 1, 1], [], []>} : vector<8x64xf32>, vector<64x256xf32>, vector<8x256xf32> -> vector<8x256xf32>
    %120 = vector.extract_strided_slice %80 {offsets = [48, 0], sizes = [8, 256], strides = [1, 1]} : vector<72x256xf32> to vector<8x256xf32>
    %121 = arith.addf %120, %119 : vector<8x256xf32>
    %c48_103 = arith.constant 48 : index
    %c0_104 = arith.constant 0 : index
    %122 = vector.load %arg16[%c48_103, %c0_104] : memref<72x256xf32, #tpu.memory_space<vmem>>, vector<8x256xf32>
    tpu.vector_store %arg16[%c48_103, %c0_104], %121 {strides = array<i32>} : memref<72x256xf32, #tpu.memory_space<vmem>>, vector<8x256xf32>,
    %c7_105 = arith.constant 7 : index
    %c0_106 = arith.constant 0 : index
    %c0_107 = arith.constant 0 : index
    %123 = vector.load %arg11[%c7_105, %c0_106, %c0_107] : memref<9x64x256xf32, #tpu.memory_space<vmem>>, vector<1x64x256xf32>
    %124 = vector.shape_cast %123 : vector<1x64x256xf32> to vector<64x256xf32>
    %cst_108 = arith.constant dense<0.000000e+00> : vector<8x256xf32>
    %125 = tpu.matmul %75, %124, %cst_108 {dimension_numbers = #tpu.dot_dimension_numbers<[1], [0], [0], [1], [0, 0, 1, 1], [], []>} : vector<8x64xf32>, vector<64x256xf32>, vector<8x256xf32> -> vector<8x256xf32>
    %126 = vector.extract_strided_slice %80 {offsets = [56, 0], sizes = [8, 256], strides = [1, 1]} : vector<72x256xf32> to vector<8x256xf32>
    %127 = arith.addf %126, %125 : vector<8x256xf32>
    %c56 = arith.constant 56 : index
    %c0_109 = arith.constant 0 : index
    %128 = vector.load %arg16[%c56, %c0_109] : memref<72x256xf32, #tpu.memory_space<vmem>>, vector<8x256xf32>
    tpu.vector_store %arg16[%c56, %c0_109], %127 {strides = array<i32>} : memref<72x256xf32, #tpu.memory_space<vmem>>, vector<8x256xf32>,
    %c8_110 = arith.constant 8 : index
    %c0_111 = arith.constant 0 : index
    %c0_112 = arith.constant 0 : index
    %129 = vector.load %arg11[%c8_110, %c0_111, %c0_112] : memref<9x64x256xf32, #tpu.memory_space<vmem>>, vector<1x64x256xf32>
    %130 = vector.shape_cast %129 : vector<1x64x256xf32> to vector<64x256xf32>
    %cst_113 = arith.constant dense<0.000000e+00> : vector<8x256xf32>
    %131 = tpu.matmul %75, %130, %cst_113 {dimension_numbers = #tpu.dot_dimension_numbers<[1], [0], [0], [1], [0, 0, 1, 1], [], []>} : vector<8x64xf32>, vector<64x256xf32>, vector<8x256xf32> -> vector<8x256xf32>
    %132 = vector.extract_strided_slice %80 {offsets = [64, 0], sizes = [8, 256], strides = [1, 1]} : vector<72x256xf32> to vector<8x256xf32>
    %133 = arith.addf %132, %131 : vector<8x256xf32>
    %c64_114 = arith.constant 64 : index
    %c0_115 = arith.constant 0 : index
    %134 = vector.load %arg16[%c64_114, %c0_115] : memref<72x256xf32, #tpu.memory_space<vmem>>, vector<8x256xf32>
    tpu.vector_store %arg16[%c64_114, %c0_115], %133 {strides = array<i32>} : memref<72x256xf32, #tpu.memory_space<vmem>>, vector<8x256xf32>,
    %c0_116 = arith.constant 0 : index
    %c0_117 = arith.constant 0 : index
    %135 = vector.load %arg16[%c0_116, %c0_117] : memref<72x256xf32, #tpu.memory_space<vmem>>, vector<72x256xf32>
    %c0_118 = arith.constant 0 : index
    %c0_119 = arith.constant 0 : index
    %136 = vector.load %arg8[%c0_118, %c0_119] : memref<8x72xf32, #tpu.memory_space<vmem>>, vector<8x72xf32>
    %cst_120 = arith.constant dense<0.000000e+00> : vector<8x256xf32>
    %137 = tpu.matmul %136, %135, %cst_120 {dimension_numbers = #tpu.dot_dimension_numbers<[1], [0], [0], [1], [0, 0, 1, 1], [], []>} : vector<8x72xf32>, vector<72x256xf32>, vector<8x256xf32> -> vector<8x256xf32>
    %c0_121 = arith.constant 0 : index
    %c0_122 = arith.constant 0 : index
    %138 = vector.load %arg9[%c0_121, %c0_122] : memref<8x1xf32, #tpu.memory_space<vmem>>, vector<8x1xf32>
    %139 = vector.broadcast %138 : vector<8x1xf32> to vector<8x256xf32>
    %140 = arith.addf %137, %139 : vector<8x256xf32>
    %cst_123 = arith.constant 0.000000e+00 : f32
    %141 = vector.broadcast %cst_123 : f32 to vector<8x256xf32>
    %142 = arith.maximumf %140, %141 : vector<8x256xf32>
    %c0_124 = arith.constant 0 : index
    %c0_125 = arith.constant 0 : index
    %c0_126 = arith.constant 0 : index
    %143 = vector.load %arg14[%c0_124, %c0_125, %c0_126] : memref<1x8x256xf32, #tpu.memory_space<vmem>>, vector<1x8x256xf32>
    %144 = vector.shape_cast %143 : vector<1x8x256xf32> to vector<8x256xf32>
    %145 = vector.shape_cast %142 : vector<8x256xf32> to vector<1x8x256xf32>
    tpu.vector_store %arg14[%c0_124, %c0_125, %c0_126], %145 {strides = array<i32>} : memref<1x8x256xf32, #tpu.memory_space<vmem>>, vector<1x8x256xf32>,
    return
  }
  func.func @transform_0(%arg0: i32) -> (i32, i32, i32) {
    %c0_i32 = arith.constant 0 : i32
    %c0_i32_0 = arith.constant 0 : i32
    %c0_i32_1 = arith.constant 0 : i32
    return %arg0, %c0_i32, %c0_i32_0 : i32, i32, i32
  }
  func.func @transform_1(%arg0: i32) -> (i32, i32, i32) {
    %c0_i32 = arith.constant 0 : i32
    %c0_i32_0 = arith.constant 0 : i32
    %c0_i32_1 = arith.constant 0 : i32
    return %arg0, %c0_i32, %c0_i32_0 : i32, i32, i32
  }
  func.func @transform_2(%arg0: i32) -> (i32, i32, i32) {
    %c0_i32 = arith.constant 0 : i32
    %c0_i32_0 = arith.constant 0 : i32
    %c0_i32_1 = arith.constant 0 : i32
    return %arg0, %c0_i32, %c0_i32_0 : i32, i32, i32
  }
  func.func @transform_3(%arg0: i32) -> (i32, i32) {
    %c0_i32 = arith.constant 0 : i32
    %c0_i32_0 = arith.constant 0 : i32
    %c0_i32_1 = arith.constant 0 : i32
    return %c0_i32, %c0_i32_0 : i32, i32
  }
  func.func @transform_4(%arg0: i32) -> (i32, i32) {
    %c0_i32 = arith.constant 0 : i32
    %c0_i32_0 = arith.constant 0 : i32
    %c0_i32_1 = arith.constant 0 : i32
    return %c0_i32, %c0_i32_0 : i32, i32
  }
  func.func @transform_5(%arg0: i32) -> (i32, i32) {
    %c0_i32 = arith.constant 0 : i32
    %c0_i32_0 = arith.constant 0 : i32
    %c0_i32_1 = arith.constant 0 : i32
    return %c0_i32, %c0_i32_0 : i32, i32
  }
  func.func @transform_6(%arg0: i32) -> (i32, i32) {
    %c0_i32 = arith.constant 0 : i32
    %c0_i32_0 = arith.constant 0 : i32
    %c0_i32_1 = arith.constant 0 : i32
    return %c0_i32, %c0_i32_0 : i32, i32
  }
  func.func @transform_7(%arg0: i32) -> (i32, i32) {
    %c0_i32 = arith.constant 0 : i32
    %c0_i32_0 = arith.constant 0 : i32
    %c0_i32_1 = arith.constant 0 : i32
    return %c0_i32, %c0_i32_0 : i32, i32
  }
  func.func @transform_8(%arg0: i32) -> (i32, i32) {
    %c0_i32 = arith.constant 0 : i32
    %c0_i32_0 = arith.constant 0 : i32
    %c0_i32_1 = arith.constant 0 : i32
    return %c0_i32, %c0_i32_0 : i32, i32
  }
  func.func @transform_9(%arg0: i32) -> (i32, i32, i32) {
    %c0_i32 = arith.constant 0 : i32
    %c0_i32_0 = arith.constant 0 : i32
    %c0_i32_1 = arith.constant 0 : i32
    %c0_i32_2 = arith.constant 0 : i32
    return %c0_i32, %c0_i32_0, %c0_i32_1 : i32, i32, i32
  }
  func.func @transform_10(%arg0: i32) -> (i32, i32, i32) {
    %c0_i32 = arith.constant 0 : i32
    %c0_i32_0 = arith.constant 0 : i32
    %c0_i32_1 = arith.constant 0 : i32
    %c0_i32_2 = arith.constant 0 : i32
    return %c0_i32, %c0_i32_0, %c0_i32_1 : i32, i32, i32
  }
  func.func @transform_11(%arg0: i32) -> (i32, i32, i32) {
    %c0_i32 = arith.constant 0 : i32
    %c0_i32_0 = arith.constant 0 : i32
    %c0_i32_1 = arith.constant 0 : i32
    return %arg0, %c0_i32, %c0_i32_0 : i32, i32, i32
  }
  func.func @transform_12(%arg0: i32) -> (i32, i32, i32) {
    %c0_i32 = arith.constant 0 : i32
    %c0_i32_0 = arith.constant 0 : i32
    %c0_i32_1 = arith.constant 0 : i32
    return %arg0, %c0_i32, %c0_i32_0 : i32, i32, i32
  }
  func.func @transform_13(%arg0: i32) -> (i32, i32, i32) {
    %c0_i32 = arith.constant 0 : i32
    %c0_i32_0 = arith.constant 0 : i32
    %c0_i32_1 = arith.constant 0 : i32
    return %arg0, %c0_i32, %c0_i32_0 : i32, i32, i32
  }
}

</mosaic_0001>

<bundles_post_ra>
// kernel: tpu_custom_call.1
= control target key start
LH: loop header
LB: loop body
LE: loop exit
PB: predicated region body
PF: predicated region fallthrough
CT: control target
= control target key end

     0   :  { %s4668_s0 = inlined_call_operand.vmem [shape: f32[2,288,16], index: 0, kind: input, shape index: {}]   ;;  %s4669_s1 = inlined_call_operand.vmem [shape: f32[2,144,64], index: 1, kind: input, shape index: {}]   ;;  %s4670_s2 = inlined_call_operand.hbm [shape: f32[2,72,256], index: 2, kind: input, shape index: {}]   ;;  %s4671_s3 = inlined_call_operand.vmem [shape: f32[16,288], index: 3, kind: input, shape index: {}]   ;;  %s4672_s4 = inlined_call_operand.vmem [shape: f32[16,1], index: 4, kind: input, shape index: {}]   ;;  %s4673_s5 = inlined_call_operand.vmem [shape: f32[8,144], index: 5, kind: input, shape index: {}]   ;;  %s4674_s6 = inlined_call_operand.vmem [shape: f32[8,1], index: 6, kind: input, shape index: {}]   ;;  %s4675_s7 = inlined_call_operand.vmem [shape: f32[8,72], index: 7, kind: input, shape index: {}]   ;;  %s4676_s8 = inlined_call_operand.vmem [shape: f32[8,1], index: 8, kind: input, shape index: {}]   ;;  %s4677_s9 = inlined_call_operand.hbm [shape: f32[9,16,64], index: 9, kind: input, shape index: {}]   ;;  %s4678_s10 = inlined_call_operand.vmem [shape: f32[9,64,256], index: 10, kind: input, shape index: {}]   ;;  %s4679_s11 = inlined_call_operand.hbm [shape: f32[2,16,16], index: 11, kind: output, shape index: {0}]   ;;  %s4680_s12 = inlined_call_operand.hbm [shape: f32[2,8,64], index: 12, kind: output, shape index: {1}]   ;;  %s4681_s13 = inlined_call_operand.hbm [shape: f32[2,8,256], index: 13, kind: output, shape index: {2}]  }
   0x1   :  { %4694 = sst [smem:[#allocation20_spill]] %s4668_s0 }
   0x2   :  { %4695 = sst [smem:[#allocation21_spill]] %s4669_s1 }
   0x3   :  { %4696 = sst [smem:[#allocation22_spill]] %s4677_s9 }
   0x4   :  { %4697 = sst [smem:[#allocation23_spill]] %s4679_s11 }
   0x5   :  { %4698 = sst [smem:[#allocation24_spill]] %s4680_s12 }
   0x6   :  { %4699 = sst [smem:[#allocation25_spill]] %s4681_s13 }
   0x7   :  { %19 = vsyncpa [#allocation5], 0 }
   0x8   :  { %21 = vsyncpa [#allocation5 + $0x1], 0 }
   0x9   :  { %22 = vsyncpa [#allocation8], 0 }
   0xa   :  { %23 = vsyncpa [#allocation6], 0 }
   0xb   :  { %25 = vsyncpa [#allocation6 + $0x1], 0 }
   0xc   :  { %26 = vsyncpa [#allocation11], 0 }
   0xd   :  { %28 = vsyncpa [#allocation11 + $0x1], 0  ;;  %s3739_s25 = smov 0   ;;  %s3741_s26 = smov 0  }
   0xe   :  { %s3743_s27 = smov 0   ;;  %s3745_s28 = smov 0  }
   0xf LB: > { %4700 = sst [smem:[#allocation17_spill]] %s3641_s25  ;;  %s3760_s29 = sadd.s32 4294967295, %s3653_s28   ;;  %s3653_s28 = sphi %s3745_s28, %s4727_s28   ;;  %s3649_s27 = sphi %s3743_s27, %s4730_s27   ;;  %s3645_s26 = sphi %s3741_s26, %s4729_s26   ;;  %s3641_s25 = sphi %s3739_s25, %s4728_s25  }
  0x10   : > { %s4682_s30 = sadd.s32 4294967294, %s3653_s28   ;;  %p106_p0 = scmp.ne.s32.totalorder %s3645_s26, %s3641_s25 }
  0x11   : > { %p4688_p1 = scmp.eq.s32.totalorder %s3760_s29, 0  ;;  %p304_p3 = scmp.eq.s32.totalorder %s4682_s30, 1 }
  0x12   : > { %p2783_p5 = scmp.ge.s32.totalorder %s3653_s28, 1  ;;  %p363_p7 = scmp.lt.s32.totalorder %s3653_s28, 3 }
  0x13   : > { %p3771_p4 = por %p4688_p1, %p106_p0  ;;  %p3776_p6 = por %p304_p3, %p106_p0 }
  0x14   : > { %p3781_p8 = pnand %p2783_p5, %p363_p7  ;;  %s3655_s17 = smov [#allocation7]  }
  0x15   : > { %s4701_s14 = scalar_select %p3771_p4, 1, 0 }
  0x16   : > { %s4702_s15 = scalar_select %p3776_p6, 1, 0 }
  0x17   : > { %s4704_s16 = scalar_select %p3781_p8, 1, 0 }
  0x18   : > { %4703 = sst [smem:[#allocation18_spill]] %s4702_s15  ;;  %s393_s18 = sshll.u32 %s3655_s17, 4  ;;  %s3785_s18 = int_to_ptr.vmem [resolvable:$true] %s393_s18 }
  0x19   : > { %p3399_p9 = pneg %p3781_p8  ;;  %s3797_s20 = sadd.s32 1, %s3653_s28  }
  0x1a   : > { %4706 = sst [smem:[#allocation19_spill]] %s3797_s20  ;;  %s93_s21 = sadd.s32 1, %s3649_s27 }
  0x1b   : > { %p3792_p11 = pnand %p3399_p9, %p4688_p1  ;;  %s90_s22 = ssub.s32 %s3653_s28, %s3797_s20 }
  0x1c   : > { %s4707_s9 = sld [smem:[#allocation22_spill]] }
  0x1d   : > { %p3467_p13 = pneg %p3792_p11 }
  0x22   : > { %s3465_s17 = scalar_lea.hbm %s4707_s9, 2304 }
  0x23   : > { %p3466_p12 = scmp.ne.s32.totalorder %s4707_s9, %s3465_s17  ;;  %p3472_p5 = scmp.lt.u32.totalorder %s3465_s17, %s4707_s9 }
  0x25   : > { %p3468_p0 = pnand %p3467_p13, %p3466_p12 }
  0x27   : > { %p3469_p3 = pneg %p3468_p0 }
  0x29   : > { %p3474_p7 = pnand %p3472_p5, %p3469_p3 }
  0x2b   : > { %3477 = shalt.err (!%p3474_p7)
}
  0x2c   : > { %s3478_s20 = scalar_lea.vmem %s3785_s18, 2304  ;;  %p3486_p2 = scmp.lt.s32.totalorder %s3785_s18, %s3785_s18 }
  0x2d   : > { %p3479_p9 = scmp.ne.s32.totalorder %s3785_s18, %s3478_s20  ;;  %p3487_p6 = scmp.lt.s32.totalorder %s3478_s20, %s3478_s20 }
  0x2f   : > { %p3481_p10 = pnand %p3479_p9, %p3467_p13  ;;  %p3488_p4 = por %p3487_p6, %p3486_p2 }
  0x31   : > { %p3482_p1 = pneg %p3481_p10 }
  0x33   : > { %p3489_p8 = pnand %p3488_p4, %p3482_p1 }
  0x35   : > { %3492 = shalt.err (!%p3489_p8)
}
  0x36   : > { %s3656_s30 = smov 128   ;;  %s3657_s13 = smov 8  }
  0x37   : > { %3402 = dma.hbm_to_vmem [thread:$0]  (!%p3792_p11), %s4707_s9, 2304, %s3785_s18, [#allocation8], %s3656_s30, %s3656_s30, %s3657_s13  }
  0x38   : > { %p91_p2 = scmp.eq.s32.totalorder %s90_s22, 0  ;;  %p100_p1 = scmp.ne.s32.totalorder %s3649_s27, %s3645_s26 }
  0x39   : > { %p101_p4 = scmp.eq.s32.totalorder %s3653_s28, 0  ;;  %p3418_p6 = scmp.lt.s32.totalorder %s3653_s28, 2 }
  0x3a   : > { %s3828_s20 = scalar_select %p91_p2, %s3649_s27, %s93_s21  }
  0x3b   : > { %p102_p8 = por %p101_p4, %p100_p1  ;;  %p4708_p10 = scmp.eq.s32.totalorder %s3760_s29, 1 }
  0x3c   : > { %s426_s24 = sand.u32 1, %s3649_s27   ;;  %s3383_s17 = smul.u32 2304, %s3653_s28 }
  0x3d   : > { %p3832_p12 = por %p4708_p10, %p100_p1  ;;  %s3382_s11 = smul.u32 144, %s426_s24 }
  0x3e   : > { %s3841_s25 = scalar_lea.hbm %s4670_s2, %s3383_s17  ;;  %p3843_p11 = pnand %p3418_p6, %p102_p8 }
  0x3f   : > { %s430_s21 = scalar_lea.vmem [#allocation4], %s3382_s11  ;;  %s3849_s30 = scalar_lea.sflag [#allocation5], %s426_s24 }
  0x40   : > { %s437_s22 = sshll.u32 %s430_s21, 4  ;;  %s3493_s13 = scalar_lea.hbm %s3841_s25, 2304  ;;  %s3847_s22 = int_to_ptr.vmem [resolvable:$true] %s437_s22 }
  0x41   : > { %p3494_p13 = scmp.ne.s32.totalorder %s3841_s25, %s3493_s13  ;;  %p3495_p0 = pneg %p3843_p11 }
  0x42   : > { %s3498_s17 = scalar_lea.hbm %s4670_s2, 4608  ;;  %p3499_p7 = scmp.lt.u32.totalorder %s3841_s25, %s4670_s2 }
  0x43   : > { %p3496_p3 = pnand %p3495_p0, %p3494_p13  ;;  %p3500_p9 = scmp.lt.u32.totalorder %s3498_s17, %s3493_s13 }
  0x44   : > { %p3502_p1 = scmp.lt.u32.totalorder %s3493_s13, %s3841_s25 }
  0x45   : > { %p3497_p5 = pneg %p3496_p3  ;;  %p3501_p2 = por %p3500_p9, %p3499_p7 }
  0x47   : > { %p3503_p4 = por %p3502_p1, %p3501_p2 }
  0x49   : > { %p3504_p6 = pnand %p3503_p4, %p3497_p5 }
  0x4b   : > { %3507 = shalt.err (!%p3504_p6)
}
  0x4c   : > { %s3508_s11 = scalar_lea.vmem %s3847_s22, 2304  ;;  %s3658_s24 = smov [#allocation4]  }
  0x4d   : > { %p3509_p8 = scmp.ne.s32.totalorder %s3847_s22, %s3508_s11  ;;  %s3513_s21 = sshll.u32 %s3658_s24, 4  ;;  %s3514_s21 = int_to_ptr.vmem [resolvable:$false] %s3513_s21 }
  0x4e   : > { %s3515_s9 = scalar_lea.vmem %s3514_s21, 4608  ;;  %p3516_p3 = scmp.lt.s32.totalorder %s3847_s22, %s3514_s21 }
  0x4f   : > { %p3511_p10 = pnand %p3509_p8, %p3495_p0  ;;  %p3517_p7 = scmp.lt.s32.totalorder %s3515_s9, %s3508_s11 }
  0x51   : > { %p3512_p13 = pneg %p3511_p10  ;;  %p3518_p9 = por %p3517_p7, %p3516_p3 }
  0x53   : > { %p3519_p2 = pnand %p3518_p9, %p3512_p13 }
  0x55   : > { %3522 = shalt.err (!%p3519_p2)
}
  0x56   : > { %s3659_s13 = smov 256   ;;  %s3660_s12 = smov 16  }
  0x57   : > { %3406 = dma.hbm_to_vmem [thread:$0]  (!%p3843_p11), %s3841_s25, 2304, %s3847_s22, %s3849_s30, %s3659_s13, %s3659_s13, %s3660_s12  }
  0x58   : > { %p4711_p0 = scmp.ne.s32.totalorder %s4704_s16, 0 }
  0x59   : > { %s3880_s15 = sand.u32 (!%p4711_p0), 1, %s3645_s26   ;;  %p4712_p5 = scmp.ne.s32.totalorder (!%p4711_p0), %s4701_s14, 0 }
  0x5a   : > { %449 = sbr.rel (%p4711_p0) target bundleno = 1372 (0x55c), region = 64  ;;  %s452_s19 = scalar_lea.sflag (!%p4711_p0), [#allocation5], %s3880_s15 }
  0x5b   : > { %s3384_s17 = smul.u32 (!%p4711_p0), 144, %s3880_s15 }
  0x5d   : > { %s3884_s11 = scalar_lea.vmem (!%p4711_p0), [#allocation4], %s3384_s17 }
  0x61   : > { %3624 = dma.done.wait (%p4712_p5), %s452_s19, 2304  }
  0x62   : > { %3626 = vsyncadd (%p4712_p5), %s452_s19, 4294964992  ;;  %p4713_p11 = scmp.eq.s32.totalorder %s3760_s29, 0 }
  0x64   : > { %3628 = dma.done.wait (%p4713_p11), [#allocation8], 2304   ;;  %p4714_p1 = pmov %p4713_p11 }
  0x65   : > { %p522_p4 = scmp.lt.s32.totalorder %s3760_s29, 1  ;;  %v3661_v0 = vmov 0   ;;  %s4715_s0 = sld [smem:[#allocation20_spill]]  ;;  %v569_v29 = vld [vmem:[%s4671_s3 + $0x8] sm:$0xff]  ;;  %vm586_vm0 = vcmask 261120   ;;  %v570_v37 = vld [vmem:[%s4671_s3 + $0x10] sm:$0xff] }
  0x66   : > { %3630 = vsyncadd (%p4714_p1), [#allocation8], 4294964992  ;;  %3463 = vset.pattern.permute.xlu0 %v3661_v0  ;;  %3464 = vset.pattern.permute.xlu1 %v3661_v0  ;;  %v574_v40 = vld [vmem:[%s4672_s4] sm:$0xff]  ;;  %v575_v42 = vld [vmem:[%s4672_s4 + $0x8] sm:$0xff]  ;;  %vm745_vm1 = vcmask 130048   ;;  %s4716_s1 = sld [smem:[#allocation21_spill]] }
  0x67   : > { %s3896_s16 = scalar_select %p522_p4, %s3760_s29, 1  ;;  %657 = vmatprep.mubr.f32.mxu0 %v569_v29  ;;  %3053 = vmatprep.mubr.msk.f32.mxu1 %vm586_vm0, %v570_v37  ;;  %v573_v48 = vld [vmem:[%s4671_s3 + $0x28] sm:$0xff]  ;;  %v568_v60 = vld [vmem:[%s4671_s3] sm:$0xff]  ;;  %v571_v62 = vld [vmem:[%s4671_s3 + $0x18] sm:$0xff]  ;;  %vm851_vm2 = vcmask 523264   ;;  %vm2484_vm3 = vcmask 588800  }
  0x68   : > { %578 = vperm.xlu0 %3463, %v574_v40   ;;  %v572_v61 = vld [vmem:[%s4671_s3 + $0x20] sm:$0xff]  ;;  %v766_v63 = vld [vmem:[#allocation7] sm:$0xff]  ;;  %v767_v0 = vld [vmem:[#allocation7 + $0x8] sm:$0xff]  ;;  %s2790_s9 = sshll.u32 %s3880_s15, 3  ;;  %s4717_s24 = sld [smem:[#allocation24_spill]] }
  0x69   : > { %s3385_s25 = smul.u32 288, %s3896_s16  ;;  %v1348_v37 = vld [vmem:[#allocation7 + $0x78] sm:$0xff]  ;;  %v1430_v40 = vld [vmem:[#allocation7 + $0x88] sm:$0xff]  ;;  %s4222_s13 = scalar_lea.vmem [#allocation10], %s2790_s9 }
  0x6a   : > { %s3386_s17 = smul.u32 144, %s3896_s16  ;;  %s2958_s16 = sshll.u32 %s3760_s29, 7 }
  0x6b   : > { %s3902_s14 = scalar_lea.vmem %s4715_s0, %s3385_s25  ;;  %s2963_s19 = sshll.u32 %s3760_s29, 8 }
  0x6c   : > { %v548_v1 = vld [vmem:[%s3902_s14 + $0x80] sm:$0xff]  ;;  %v549_v2 = vld [vmem:[%s3902_s14 + $0x88] sm:$0xff]  ;;  %v550_v6 = vld [vmem:[%s3902_s14 + $0x90] sm:$0xff]  ;;  %583 = vperm.xlu0 %3463, %v575_v42   ;;  %v3662_v42 = vmov 0.0|0.0   ;;  %s4044_s18 = scalar_lea.vmem %s4716_s1, %s3386_s17  ;;  %s2603_s17 = sshll.u32 %s4222_s13, 4  ;;  %s4557_s17 = int_to_ptr.vmem [resolvable:$true] %s2603_s17 }
  0x6d   : > { %v532_v3 = vld [vmem:[%s3902_s14] sm:$0xff]  ;;  %v3119_v4 = vpack.c.bf16 %v549_v2, %v548_v1  ;;  %v533_v5 = vld [vmem:[%s3902_s14 + $0x8] sm:$0xff]  ;;  %v551_v7 = vld [vmem:[%s3902_s14 + $0x98] sm:$0xff]  ;;  %v3159_v1 = vpack.c.bf16 %v767_v0, %v766_v63 }
  0x6e   : > { %v3121_v8 = vpack.c.bf16 %v533_v5, %v532_v3  ;;  %v3123_v9 = vpack.c.bf16 %v551_v7, %v550_v6  ;;  %v534_v10 = vld [vmem:[%s3902_s14 + $0x10] sm:$0xff]  ;;  %v535_v11 = vld [vmem:[%s3902_s14 + $0x18] sm:$0xff]  ;;  %v552_v12 = vld [vmem:[%s3902_s14 + $0xa0] sm:$0xff]  ;;  %s4554_s21 = scalar_lea.hbm %s4717_s24, %s2958_s16 }
  0x6f   : > { %3120 = vmatprep.subr.bf16.mxu0 %v3119_v4  ;;  %v553_v13 = vld [vmem:[%s3902_s14 + $0xa8] sm:$0xff]  ;;  %v3125_v14 = vpack.c.bf16 %v535_v11, %v534_v10  ;;  %v536_v16 = vld [vmem:[%s3902_s14 + $0x20] sm:$0xff]  ;;  %v554_v18 = vld [vmem:[%s3902_s14 + $0xb0] sm:$0xff] }
  0x70   : > { %3122 = vmatpush3.bf16.msra.mxu0 %v3121_v8  ;;  %v3127_v15 = vpack.c.bf16 %v553_v13, %v552_v12  ;;  %v537_v17 = vld [vmem:[%s3902_s14 + $0x28] sm:$0xff]  ;;  %v555_v19 = vld [vmem:[%s3902_s14 + $0xb8] sm:$0xff]  ;;  %v538_v22 = vld [vmem:[%s3902_s14 + $0x30] sm:$0xff] }
  0x71   : > { %3124 = vmatprep.subr.bf16.mxu0 %v3123_v9  ;;  %v3129_v20 = vpack.c.bf16 %v537_v17, %v536_v16  ;;  %v3131_v21 = vpack.c.bf16 %v555_v19, %v554_v18  ;;  %v539_v23 = vld [vmem:[%s3902_s14 + $0x38] sm:$0xff]  ;;  %v556_v24 = vld [vmem:[%s3902_s14 + $0xc0] sm:$0xff]  ;;  %v557_v25 = vld [vmem:[%s3902_s14 + $0xc8] sm:$0xff] }
  0x72   : > { %v564_v26 = vld [vmem:[%s3902_s14 + $0x100] sm:$0xff]  ;;  %v565_v27 = vld [vmem:[%s3902_s14 + $0x108] sm:$0xff]  ;;  %v3133_v30 = vpack.c.bf16 %v539_v23, %v538_v22  ;;  %v566_v31 = vld [vmem:[%s3902_s14 + $0x110] sm:$0xff]  ;;  %v3135_v33 = vpack.c.bf16 %v557_v25, %v556_v24 }
  0x73   : > { %v3151_v28 = vpack.c.bf16 %v565_v27, %v564_v26  ;;  %v567_v32 = vld [vmem:[%s3902_s14 + $0x118] sm:$0xff]  ;;  %v540_v34 = vld [vmem:[%s3902_s14 + $0x40] sm:$0xff]  ;;  %v541_v35 = vld [vmem:[%s3902_s14 + $0x48] sm:$0xff] }
  0x74   : > { %3126 = vmatpush3.bf16.msra.mxu0 %v3125_v14  ;;  %v3155_v36 = vpack.c.bf16 %v567_v32, %v566_v31  ;;  %v558_v38 = vld [vmem:[%s3902_s14 + $0xd0] sm:$0xff]  ;;  %v559_v39 = vld [vmem:[%s3902_s14 + $0xd8] sm:$0xff]  ;;  %v3137_v41 = vpack.c.bf16 %v541_v35, %v540_v34  ;;  %v560_v46 = vld [vmem:[%s3902_s14 + $0xe0] sm:$0xff] }
  0x75   : > { %3128 = vmatprep.subr.bf16.mxu0 %v3127_v15  ;;  %3152 = vmatprep.subr.bf16.mxu1 %v3151_v28  ;;  %v3139_v43 = vpack.c.bf16 %v559_v39, %v558_v38  ;;  %v542_v44 = vld [vmem:[%s3902_s14 + $0x50] sm:$0xff]  ;;  %v543_v45 = vld [vmem:[%s3902_s14 + $0x58] sm:$0xff]  ;;  %v561_v47 = vld [vmem:[%s3902_s14 + $0xe8] sm:$0xff] }
  0x76   : > { %3154 = vmatpush3.bf16.msra.mxu1 %v3151_v28  ;;  %v3141_v49 = vpack.c.bf16 %v543_v45, %v542_v44  ;;  %v3143_v50 = vpack.c.bf16 %v561_v47, %v560_v46  ;;  %v544_v51 = vld [vmem:[%s3902_s14 + $0x60] sm:$0xff]  ;;  %v545_v52 = vld [vmem:[%s3902_s14 + $0x68] sm:$0xff]  ;;  %v562_v53 = vld [vmem:[%s3902_s14 + $0xf0] sm:$0xff] }
  0x77   : > { %3156 = vmatprep.subr.bf16.mxu1 %v3155_v36  ;;  %v563_v54 = vld [vmem:[%s3902_s14 + $0xf8] sm:$0xff]  ;;  %v3145_v55 = vpack.c.bf16 %v545_v52, %v544_v51  ;;  %v546_v57 = vld [vmem:[%s3902_s14 + $0x70] sm:$0xff]  ;;  %v855_v2 = vld [vmem:[#allocation7 + $0x10] sm:$0xff] }
  0x78   : > { %3130 = vmatpush3.bf16.msra.mxu0 %v3129_v20  ;;  %v3147_v56 = vpack.c.bf16 %v563_v54, %v562_v53  ;;  %v547_v58 = vld [vmem:[%s3902_s14 + $0x78] sm:$0xff]  ;;  %v856_v3 = vld [vmem:[#allocation7 + $0x18] sm:$0xff]  ;;  %s4693_s14 = sshll.u32 %s3880_s15, 4  ;;  %v937_v19 = vld [vmem:[#allocation7 + $0x20] sm:$0xff] }
  0x79   : > { %3132 = vmatprep.subr.bf16.mxu0 %v3131_v21  ;;  %v3149_v59 = vpack.c.bf16 %v547_v58, %v546_v57  ;;  %v3163_v4 = vpack.c.bf16 %v856_v3, %v855_v2  ;;  %v938_v20 = vld [vmem:[#allocation7 + $0x28] sm:$0xff]  ;;  %s3970_s12 = scalar_lea.vmem [#allocation9], %s4693_s14  ;;  %v1019_v24 = vld [vmem:[#allocation7 + $0x30] sm:$0xff]  ;;  %v1020_v25 = vld [vmem:[#allocation7 + $0x38] sm:$0xff]  ;;  %s3523_s14 = scalar_lea.vmem %s4557_s17, 128 }
  0x7a   : > { %3158 = vmatpush3.bf16.msra.mxu1 %v3155_v36  ;;  %v3167_v23 = vpack.c.bf16 %v938_v20, %v937_v19  ;;  %v3171_v26 = vpack.c.bf16 %v1020_v25, %v1019_v24  ;;  %v1101_v27 = vld [vmem:[#allocation7 + $0x40] sm:$0xff]  ;;  %v1102_v28 = vld [vmem:[#allocation7 + $0x48] sm:$0xff]  ;;  %v1184_v31 = vld [vmem:[#allocation7 + $0x58] sm:$0xff]  ;;  %s2587_s22 = sshll.u32 %s3970_s12, 4  ;;  %p3524_p6 = scmp.ne.s32.totalorder %s4557_s17, %s3523_s14  ;;  %s4549_s22 = int_to_ptr.vmem [resolvable:$true] %s2587_s22 }
  0x7b   : > { %3160 = vmatprep.subr.bf16.mxu1 %v3159_v1  ;;  %v3175_v29 = vpack.c.bf16 %v1102_v28, %v1101_v27  ;;  %v1266_v34 = vld [vmem:[#allocation7 + $0x68] sm:$0xff]  ;;  %v1347_v36 = vld [vmem:[#allocation7 + $0x70] sm:$0xff]  ;;  %v1429_v39 = vld [vmem:[#allocation7 + $0x80] sm:$0xff] }
  0x7c   : > { %3134 = vmatpush3.bf16.msra.mxu0 %v3133_v30  ;;  %v1183_v30 = vld [vmem:[#allocation7 + $0x50] sm:$0xff]  ;;  %v3187_v38 = vpack.c.bf16 %v1348_v37, %v1347_v36  ;;  %v1630_v45 = vld [vmem:[%s4678_s10 + $0x8] sm:$0xff]  ;;  %v1632_v46 = vld [vmem:[%s4678_s10 + $0x18] sm:$0xff]  ;;  %p3525_p8 = pnand %p3524_p6, %p3832_p12 }
  0x7d   : > { %3136 = vmatprep.subr.bf16.mxu0 %v3135_v33  ;;  %3054 = vmatmul.mubr.msk.f32.vlgmr.msra.gmra.mrb[0].mxu1 %vm586_vm0, %v573_v48  ;;  %v3179_v32 = vpack.c.bf16 %v1184_v31, %v1183_v30  ;;  %v1265_v33 = vld [vmem:[#allocation7 + $0x60] sm:$0xff]  ;;  %v1530_v44 = vld [vmem:[%s4674_s6] sm:$0xff]  ;;  %v3222_v48 = vpack.c.bf16 %v1632_v46, %v1630_v45  ;;  %v1634_v52 = vld [vmem:[%s4678_s10 + $0x28] sm:$0xff] }
  0x7e   : > { %3162 = vmatpush3.bf16.msra.mxu1 %v3159_v1  ;;  %v3183_v35 = vpack.c.bf16 %v1266_v34, %v1265_v33  ;;  %1533 = vperm.xlu1 %3464, %v1530_v44   ;;  %v2478_v47 = vld [vmem:[%s4676_s8] sm:$0xff]  ;;  %v1636_v53 = vld [vmem:[%s4678_s10 + $0x38] sm:$0xff]  ;;  %v1638_v58 = vld [vmem:[%s4678_s10 + $0x48] sm:$0xff]  ;;  %p3526_p10 = pneg %p3525_p8 }
  0x7f   : > { %3164 = vmatprep.subr.bf16.mxu1 %v3163_v4  ;;  %v3226_v54 = vpack.c.bf16 %v1636_v53, %v1634_v52  ;;  %v749_v0 = vld [vmem:[%s4044_s18 + $0x8] sm:$0xff]  ;;  %v748_v1 = vld [vmem:[%s4044_s18] sm:$0xff]  ;;  %v754_v20 = vld [vmem:[%s4044_s18 + $0x30] sm:$0xff] }
  0x80   : > { %3138 = vmatpush3.bf16.msra.mxu0 %v3137_v41  ;;  %v3191_v41 = vpack.c.bf16 %v1430_v40, %v1429_v39  ;;  %v757_v27 = vld [vmem:[%s4044_s18 + $0x48] sm:$0xff]  ;;  %v759_v36 = vld [vmem:[%s4044_s18 + $0x58] sm:$0xff] }
  0x81   : > { %3140 = vmatprep.subr.bf16.mxu0 %v3139_v43  ;;  %v1529_v43 = vld [vmem:[%s4673_s5 + $0x8] sm:$0xff] }
  0x82   : > { %2481 = vperm.xlu1 %3464, %v2478_v47   ;;  %v761_v46 = vld [vmem:[%s4044_s18 + $0x68] sm:$0xff] }
  0x84   : > { %3142 = vmatpush3.bf16.msra.mxu0 %v3141_v49  ;;  %v1629_v49 = vld [vmem:[%s4678_s10] sm:$0xff] }
  0x85   : > { %3144 = vmatprep.subr.bf16.mxu0 %v3143_v50  ;;  %v1631_v50 = vld [vmem:[%s4678_s10 + $0x10] sm:$0xff] }
  0x86   : > { %v3224_v51 = vpack.c.bf16 %v1631_v50, %v1629_v49 }
  0x88   : > { %3146 = vmatpush3.bf16.msra.mxu0 %v3145_v55  ;;  %v1633_v55 = vld [vmem:[%s4678_s10 + $0x20] sm:$0xff] }
  0x89   : > { %3148 = vmatprep.subr.bf16.mxu0 %v3147_v56  ;;  %v1635_v56 = vld [vmem:[%s4678_s10 + $0x30] sm:$0xff] }
  0x8a   : > { %v3228_v57 = vpack.c.bf16 %v1635_v56, %v1633_v55  ;;  %v763_v55 = vld [vmem:[%s4044_s18 + $0x78] sm:$0xff] }
  0x8c   : > { %3150 = vmatpush3.bf16.msra.mxu0 %v3149_v59  ;;  %v1640_v59 = vld [vmem:[%s4678_s10 + $0x58] sm:$0xff] }
  0x8d   : > { %3195 = vmatprep.subr.bf16.mxu0 %v3662_v42 }
  0x8f   : > { %658 = vmatmul.mubr.f32.vlgmr.msra.gmra.mrb[0].mxu0 %v568_v60  ;;  %v3230_v60 = vpack.c.bf16 %v1640_v59, %v1638_v58 }
  0x90   : > { %662 = vmatprep.mubr.f32.mxu0 %v572_v61  ;;  %v1637_v61 = vld [vmem:[%s4678_s10 + $0x40] sm:$0xff] }
  0x93   : > { %663 = vmatmul.mubr.f32.gmra.mrb[2].mxu0 %v571_v62  ;;  %v1639_v62 = vld [vmem:[%s4678_s10 + $0x50] sm:$0xff] }
  0x94   : > { %2814 = vmatprep.mubr.msk.f32.mxu0 %vm745_vm1, %v1529_v43  ;;  %v3232_v63 = vpack.c.bf16 %v1639_v62, %v1637_v61 }
  0xe7   : > { %v579_v8 = vpop.permute.xlu0 %578 }
  0xeb   : > { %v584_v16 = vpop.permute.xlu0 %583 }
 0x150   : > { %v3055_v5 = vpop.f32.mrb[0].mxu1 }
 0x151   : > { %v734_v6 = vpop.f32.mrb[1].mxu1 }
 0x162   : > { %v2997_v7 = vpop.f32.mrb[0].mxu0 }
 0x163   : > { %v2998_v9 = vpop.f32.mrb[1].mxu0 }
 0x164   : > { %v2999_v10 = vadd.f32 %v2998_v9, %v2997_v7  ;;  %v750_v7 = vld [vmem:[%s4044_s18 + $0x10] sm:$0xff] }
 0x166   : > { %v3000_v11 = vpop.f32.mrb[2].mxu0  ;;  %v660_v12 = vadd.f32 %v2999_v10, %v579_v8 }
 0x167   : > { %v3001_v13 = vpop.f32.mrb[3].mxu0 }
 0x168   : > { %v3002_v14 = vadd.f32 %v3001_v13, %v3000_v11  ;;  %v735_v15 = vadd.f32 %v734_v6, %v660_v12  ;;  %v751_v6 = vld [vmem:[%s4044_s18 + $0x18] sm:$0xff]  ;;  %v753_v12 = vld [vmem:[%s4044_s18 + $0x28] sm:$0xff]  ;;  %v752_v13 = vld [vmem:[%s4044_s18 + $0x20] sm:$0xff] }
 0x16a   : > { %v665_v17 = vadd.f32 %v3002_v14, %v584_v16  ;;  %v743_v18 = vmax.f32 %v735_v15, 0.0 }
 0x16c   : > { %v740_v21 = vadd.f32 %v3055_v5, %v665_v17  ;;  %3060 = vmatprep.mubr.msk.f32.mxu1 %vm745_vm1, %v743_v18  ;;  %746 = vst.msk [vmem:[%s3970_s12] sm:$0xff] %vm745_vm1, %v743_v18 }
 0x16e   : > { %v744_v22 = vmax.f32 %v740_v21, 0.0 }
 0x170   : > { %3061 = vmatmul.mubr.msk.f32.vlgmr.msra.gmra.mrb[2].mxu1 %vm745_vm1, %v744_v22  ;;  %747 = vst.msk [vmem:[%s3970_s12 + $0x8] sm:$0xff] %vm745_vm1, %v744_v22  ;;  %s3664_s12 = smov [#allocation10]  }
 0x171   : > { %3166 = vmatpush3.bf16.msra.mxu1 %v3163_v4  ;;  %3067 = vmatprep.mubr.msk.f32.mxu1 %vm745_vm1, %v743_v18  ;;  %s3527_s9 = sshll.u32 %s3664_s12, 4  ;;  %s3528_s9 = int_to_ptr.vmem [resolvable:$false] %s3527_s9 }
 0x172   : > { %3168 = vmatprep.subr.bf16.mxu1 %v3167_v23  ;;  %s3529_s25 = scalar_lea.vmem %s3528_s9, 256  ;;  %p3530_p13 = scmp.lt.s32.totalorder %s4557_s17, %s3528_s9 }
 0x173   : > { %p3531_p3 = scmp.lt.s32.totalorder %s3529_s25, %s3523_s14 }
 0x174   : > { %3068 = vmatmul.mubr.msk.f32.vlgmr.msra.gmra.mrb[4].mxu1 %vm745_vm1, %v744_v22 }
 0x175   : > { %3170 = vmatpush3.bf16.msra.mxu1 %v3167_v23  ;;  %3074 = vmatprep.mubr.msk.f32.mxu1 %vm745_vm1, %v743_v18  ;;  %p3532_p7 = por %p3531_p3, %p3530_p13 }
 0x176   : > { %3172 = vmatprep.subr.bf16.mxu1 %v3171_v26 }
 0x177   : > { %p3533_p9 = pnand %p3532_p7, %p3526_p10 }
 0x178   : > { %3075 = vmatmul.mubr.msk.f32.vlgmr.msra.gmra.mrb[6].mxu1 %vm745_vm1, %v744_v22 }
 0x179   : > { %3174 = vmatpush3.bf16.msra.mxu1 %v3171_v26  ;;  %3081 = vmatprep.mubr.msk.f32.mxu1 %vm745_vm1, %v743_v18 }
 0x17a   : > { %3176 = vmatprep.subr.bf16.mxu1 %v3175_v29 }
 0x17c   : > { %3082 = vmatmul.mubr.msk.f32.vlgmr.msra.gmra.mrb[8].mxu1 %vm745_vm1, %v744_v22 }
 0x17d   : > { %3178 = vmatpush3.bf16.msra.mxu1 %v3175_v29  ;;  %3088 = vmatprep.mubr.msk.f32.mxu1 %vm745_vm1, %v743_v18  ;;  %v756_v29 = vld [vmem:[%s4044_s18 + $0x40] sm:$0xff] }
 0x17e   : > { %3180 = vmatprep.subr.bf16.mxu1 %v3179_v32 }
 0x180   : > { %3089 = vmatmul.mubr.msk.f32.vlgmr.msra.gmra.mrb[10].mxu1 %vm745_vm1, %v744_v22 }
 0x181   : > { %3182 = vmatpush3.bf16.msra.mxu1 %v3179_v32  ;;  %3095 = vmatprep.mubr.msk.f32.mxu1 %vm745_vm1, %v743_v18 }
 0x182   : > { %3184 = vmatprep.subr.bf16.mxu1 %v3183_v35 }
 0x184   : > { %3096 = vmatmul.mubr.msk.f32.vlgmr.msra.gmra.mrb[12].mxu1 %vm745_vm1, %v744_v22 }
 0x185   : > { %3186 = vmatpush3.bf16.msra.mxu1 %v3183_v35  ;;  %3102 = vmatprep.mubr.msk.f32.mxu1 %vm745_vm1, %v743_v18 }
 0x186   : > { %3188 = vmatprep.subr.bf16.mxu1 %v3187_v38 }
 0x188   : > { %3103 = vmatmul.mubr.msk.f32.vlgmr.msra.gmra.mrb[14].mxu1 %vm745_vm1, %v744_v22 }
 0x189   : > { %3190 = vmatpush3.bf16.msra.mxu1 %v3187_v38  ;;  %3109 = vmatprep.mubr.msk.f32.mxu1 %vm745_vm1, %v743_v18  ;;  %v758_v38 = vld [vmem:[%s4044_s18 + $0x50] sm:$0xff] }
 0x18a   : > { %3192 = vmatprep.subr.bf16.mxu1 %v3191_v41 }
 0x18c   : > { %3110 = vmatmul.mubr.msk.f32.vlgmr.msra.gmra.mrb[16].mxu1 %vm745_vm1, %v744_v22 }
 0x18d   : > { %3194 = vmatpush3.bf16.msra.mxu1 %v3191_v41  ;;  %3116 = vmatprep.mubr.msk.f32.mxu1 %vm745_vm1, %v743_v18  ;;  %v755_v18 = vld [vmem:[%s4044_s18 + $0x38] sm:$0xff] }
 0x18e   : > { %3223 = vmatprep.subr.bf16.mxu1 %v3222_v48  ;;  %v760_v48 = vld [vmem:[%s4044_s18 + $0x60] sm:$0xff] }
 0x190   : > { %3117 = vmatmul.mubr.msk.f32.vlgmr.msra.gmra.mrb[18].mxu1 %vm745_vm1, %v744_v22 }
 0x191   : > { %3225 = vmatpush1.bf16.msra.mxu1 %v3224_v51 }
 0x192   : > { %3227 = vmatprep.subr.bf16.mxu1 %v3226_v54 }
 0x195   : > { %3229 = vmatpush1.bf16.msra.mxu1 %v3228_v57  ;;  %v762_v57 = vld [vmem:[%s4044_s18 + $0x70] sm:$0xff] }
 0x196   : > { %3231 = vmatprep.subr.bf16.mxu1 %v3230_v60 }
 0x199   : > { %3233 = vmatpush1.bf16.msra.mxu1 %v3232_v63 }
 0x243   : > { %v3062_v2 = vpop.f32.mrb[2].mxu1 }
 0x244   : > { %v850_v3 = vadd.f32 %v3062_v2, %v749_v0  ;;  %v840_v4 = vpop.f32.mrb[3].mxu1  ;;  %v765_v0 = vld [vmem:[%s4044_s18 + $0x88] sm:$0xff]  ;;  %v764_v2 = vld [vmem:[%s4044_s18 + $0x80] sm:$0xff]  ;;  %s2568_s18 = sand.u32 1, %s3760_s29  }
 0x245   : > { %v849_v5 = vadd.f32 %v840_v4, %v748_v1  ;;  %s4560_s0 = scalar_lea.sflag [#allocation11], %s2568_s18 }
 0x246   : > { %853 = vst.msk [vmem:[#allocation2 + $0x8] sm:$0xff] %vm851_vm2, %v850_v3 }
 0x247   : > { %852 = vst.msk [vmem:[#allocation2] sm:$0xff] %vm851_vm2, %v849_v5  ;;  %v3069_v8 = vpop.f32.mrb[4].mxu1 }
 0x248   : > { %v933_v9 = vadd.f32 %v3069_v8, %v751_v6  ;;  %v923_v10 = vpop.f32.mrb[5].mxu1 }
 0x249   : > { %v932_v11 = vadd.f32 %v923_v10, %v750_v7 }
 0x24a   : > { %935 = vst.msk [vmem:[#allocation2 + $0x18] sm:$0xff] %vm851_vm2, %v933_v9 }
 0x24b   : > { %934 = vst.msk [vmem:[#allocation2 + $0x10] sm:$0xff] %vm851_vm2, %v932_v11  ;;  %v3076_v14 = vpop.f32.mrb[6].mxu1 }
 0x24c   : > { %v1015_v15 = vadd.f32 %v3076_v14, %v753_v12  ;;  %v1005_v16 = vpop.f32.mrb[7].mxu1 }
 0x24d   : > { %v1014_v17 = vadd.f32 %v1005_v16, %v752_v13  ;;  %v1511_v19 = vld [vmem:[#allocation2 + $0x8] sm:$0xff]  ;;  %v2853_v16 = vld [vmem:[%s4678_s10 + $0x198] sm:$0xff] }
 0x24e   : > { %1017 = vst.msk [vmem:[#allocation2 + $0x28] sm:$0xff] %vm851_vm2, %v1015_v15  ;;  %v1510_v21 = vld [vmem:[#allocation2] sm:$0xff]  ;;  %v2851_v15 = vld [vmem:[%s4678_s10 + $0x188] sm:$0xff] }
 0x24f   : > { %1016 = vst.msk [vmem:[#allocation2 + $0x20] sm:$0xff] %vm851_vm2, %v1014_v17  ;;  %v3083_v22 = vpop.f32.mrb[8].mxu1  ;;  %v3196_v23 = vpack.c.bf16 %v1511_v19, %v1510_v21  ;;  %v3270_v19 = vpack.c.bf16 %v2853_v16, %v2851_v15  ;;  %v2852_v21 = vld [vmem:[%s4678_s10 + $0x190] sm:$0xff]  ;;  %v2893_v15 = vld [vmem:[%s4678_s10 + $0x2c8] sm:$0xff]  ;;  %v2895_v16 = vld [vmem:[%s4678_s10 + $0x2d8] sm:$0xff] }
 0x250   : > { %v1097_v24 = vadd.f32 %v3083_v22, %v755_v18  ;;  %v1087_v25 = vpop.f32.mrb[9].mxu1 }
 0x251   : > { %v1096_v26 = vadd.f32 %v1087_v25, %v754_v20  ;;  %3197 = vmatpush1.bf16.msra.mxu0 %v3196_v23  ;;  %v1513_v28 = vld [vmem:[#allocation2 + $0x18] sm:$0xff]  ;;  %v2850_v20 = vld [vmem:[%s4678_s10 + $0x180] sm:$0xff]  ;;  %v2855_v23 = vld [vmem:[%s4678_s10 + $0x1a8] sm:$0xff] }
 0x252   : > { %1099 = vst.msk [vmem:[#allocation2 + $0x38] sm:$0xff] %vm851_vm2, %v1097_v24  ;;  %3198 = vmatprep.subr.bf16.mxu0 %v3662_v42  ;;  %v1512_v30 = vld [vmem:[#allocation2 + $0x10] sm:$0xff]  ;;  %v2857_v24 = vld [vmem:[%s4678_s10 + $0x1b8] sm:$0xff]  ;;  %v3272_v25 = vpack.c.bf16 %v2852_v21, %v2850_v20 }
 0x253   : > { %1098 = vst.msk [vmem:[#allocation2 + $0x30] sm:$0xff] %vm851_vm2, %v1096_v26  ;;  %v3090_v31 = vpop.f32.mrb[10].mxu1  ;;  %v3199_v32 = vpack.c.bf16 %v1513_v28, %v1512_v30  ;;  %v3274_v26 = vpack.c.bf16 %v2857_v24, %v2855_v23  ;;  %v2856_v28 = vld [vmem:[%s4678_s10 + $0x1b0] sm:$0xff]  ;;  %v2861_v30 = vld [vmem:[%s4678_s10 + $0x1d8] sm:$0xff]  ;;  %v2892_v23 = vld [vmem:[%s4678_s10 + $0x2c0] sm:$0xff] }
 0x254   : > { %v1179_v33 = vadd.f32 %v3090_v31, %v757_v27  ;;  %v1169_v34 = vpop.f32.mrb[11].mxu1  ;;  %v2854_v27 = vld [vmem:[%s4678_s10 + $0x1a0] sm:$0xff]  ;;  %v2826_v20 = vld [vmem:[%s4678_s10 + $0xd0] sm:$0xff] }
 0x255   : > { %v1178_v35 = vadd.f32 %v1169_v34, %v756_v29  ;;  %3200 = vmatpush1.bf16.msra.mxu0 %v3199_v32  ;;  %v1515_v37 = vld [vmem:[#allocation2 + $0x28] sm:$0xff]  ;;  %v3276_v31 = vpack.c.bf16 %v2856_v28, %v2854_v27  ;;  %v2860_v34 = vld [vmem:[%s4678_s10 + $0x1d0] sm:$0xff]  ;;  %v2899_v27 = vld [vmem:[%s4678_s10 + $0x2f8] sm:$0xff] }
 0x256   : > { %1181 = vst.msk [vmem:[#allocation2 + $0x48] sm:$0xff] %vm851_vm2, %v1179_v33  ;;  %3201 = vmatprep.subr.bf16.mxu0 %v3662_v42  ;;  %v1514_v39 = vld [vmem:[#allocation2 + $0x20] sm:$0xff]  ;;  %v2859_v29 = vld [vmem:[%s4678_s10 + $0x1c8] sm:$0xff]  ;;  %v2894_v24 = vld [vmem:[%s4678_s10 + $0x2d0] sm:$0xff] }
 0x257   : > { %1180 = vst.msk [vmem:[#allocation2 + $0x40] sm:$0xff] %vm851_vm2, %v1178_v35  ;;  %v3097_v40 = vpop.f32.mrb[12].mxu1  ;;  %v3202_v41 = vpack.c.bf16 %v1515_v37, %v1514_v39  ;;  %v3278_v32 = vpack.c.bf16 %v2861_v30, %v2859_v29  ;;  %v2858_v33 = vld [vmem:[%s4678_s10 + $0x1c0] sm:$0xff]  ;;  %v1644_v37 = vld [vmem:[%s4678_s10 + $0x78] sm:$0xff]  ;;  %v3312_v29 = vpack.c.bf16 %v2894_v24, %v2892_v23  ;;  %v2868_v23 = vld [vmem:[%s4678_s10 + $0x208] sm:$0xff] }
 0x258   : > { %v1261_v43 = vadd.f32 %v3097_v40, %v759_v36  ;;  %v1251_v44 = vpop.f32.mrb[13].mxu1  ;;  %v3280_v35 = vpack.c.bf16 %v2860_v34, %v2858_v33  ;;  %v1642_v36 = vld [vmem:[%s4678_s10 + $0x68] sm:$0xff]  ;;  %v2865_v40 = vld [vmem:[%s4678_s10 + $0x1f8] sm:$0xff]  ;;  %v2828_v30 = vld [vmem:[%s4678_s10 + $0xe0] sm:$0xff] }
 0x259   : > { %v1260_v45 = vadd.f32 %v1251_v44, %v758_v38  ;;  %3203 = vmatpush1.bf16.msra.mxu0 %v3202_v41  ;;  %v1517_v47 = vld [vmem:[#allocation2 + $0x38] sm:$0xff]  ;;  %v2863_v38 = vld [vmem:[%s4678_s10 + $0x1e8] sm:$0xff]  ;;  %v3234_v39 = vpack.c.bf16 %v1644_v37, %v1642_v36  ;;  %v1641_v41 = vld [vmem:[%s4678_s10 + $0x60] sm:$0xff] }
 0x25a   : > { %1263 = vst.msk [vmem:[#allocation2 + $0x58] sm:$0xff] %vm851_vm2, %v1261_v43  ;;  %3204 = vmatprep.subr.bf16.mxu0 %v3662_v42  ;;  %v1516_v49 = vld [vmem:[#allocation2 + $0x30] sm:$0xff]  ;;  %v3282_v44 = vpack.c.bf16 %v2865_v40, %v2863_v38  ;;  %v2896_v34 = vld [vmem:[%s4678_s10 + $0x2e0] sm:$0xff]  ;;  %v2834_v36 = vld [vmem:[%s4678_s10 + $0x108] sm:$0xff] }
 0x25b   : > { %1262 = vst.msk [vmem:[#allocation2 + $0x50] sm:$0xff] %vm851_vm2, %v1260_v45  ;;  %v3104_v50 = vpop.f32.mrb[14].mxu1  ;;  %v3205_v51 = vpack.c.bf16 %v1517_v47, %v1516_v49  ;;  %v1643_v43 = vld [vmem:[%s4678_s10 + $0x70] sm:$0xff]  ;;  %3235 = vmatprep.subr.bf16.mxu1 %v3234_v39  ;;  %v2817_v49 = vld [vmem:[%s4678_s10 + $0x88] sm:$0xff]  ;;  %v2836_v37 = vld [vmem:[%s4678_s10 + $0x118] sm:$0xff] }
 0x25c   : > { %v1343_v52 = vadd.f32 %v3104_v50, %v761_v46  ;;  %v1333_v53 = vpop.f32.mrb[15].mxu1  ;;  %v3236_v45 = vpack.c.bf16 %v1643_v43, %v1641_v41  ;;  %v2862_v46 = vld [vmem:[%s4678_s10 + $0x1e0] sm:$0xff]  ;;  %v2864_v47 = vld [vmem:[%s4678_s10 + $0x1f0] sm:$0xff]  ;;  %v2819_v50 = vld [vmem:[%s4678_s10 + $0x98] sm:$0xff] }
 0x25d   : > { %v1342_v54 = vadd.f32 %v1333_v53, %v760_v48  ;;  %3206 = vmatpush1.bf16.msra.mxu0 %v3205_v51  ;;  %v1519_v56 = vld [vmem:[#allocation2 + $0x48] sm:$0xff]  ;;  %v3284_v48 = vpack.c.bf16 %v2864_v47, %v2862_v46  ;;  %v2887_v53 = vld [vmem:[%s4678_s10 + $0x298] sm:$0xff]  ;;  %v2833_v43 = vld [vmem:[%s4678_s10 + $0x100] sm:$0xff] }
 0x25e   : > { %1345 = vst.msk [vmem:[#allocation2 + $0x68] sm:$0xff] %vm851_vm2, %v1343_v52  ;;  %3207 = vmatprep.subr.bf16.mxu0 %v3662_v42  ;;  %v1518_v58 = vld [vmem:[#allocation2 + $0x40] sm:$0xff]  ;;  %3237 = vmatpush1.bf16.msra.mxu1 %v3236_v45  ;;  %v2885_v51 = vld [vmem:[%s4678_s10 + $0x288] sm:$0xff]  ;;  %v3238_v52 = vpack.c.bf16 %v2819_v50, %v2817_v49  ;;  %v2921_v39 = vld [vmem:[%s4678_s10 + $0x398] sm:$0xff]  ;;  %v3254_v45 = vpack.c.bf16 %v2836_v37, %v2834_v36 }
 0x25f   : > { %1344 = vst.msk [vmem:[#allocation2 + $0x60] sm:$0xff] %vm851_vm2, %v1342_v54  ;;  %v3111_v59 = vpop.f32.mrb[16].mxu1  ;;  %v3208_v60 = vpack.c.bf16 %v1519_v56, %v1518_v58  ;;  %v3302_v54 = vpack.c.bf16 %v2887_v53, %v2885_v51  ;;  %v2816_v56 = vld [vmem:[%s4678_s10 + $0x80] sm:$0xff]  ;;  %v2919_v38 = vld [vmem:[%s4678_s10 + $0x388] sm:$0xff]  ;;  %v2840_v50 = vld [vmem:[%s4678_s10 + $0x138] sm:$0xff] }
 0x260   : > { %v1425_v61 = vadd.f32 %v3111_v59, %v763_v55  ;;  %v1415_v62 = vpop.f32.mrb[17].mxu1  ;;  %v3663_v55 = vmov 0.0   ;;  %3239 = vmatprep.subr.bf16.mxu1 %v3238_v52  ;;  %v2884_v58 = vld [vmem:[%s4678_s10 + $0x280] sm:$0xff]  ;;  %v2886_v59 = vld [vmem:[%s4678_s10 + $0x290] sm:$0xff]  ;;  %v3334_v46 = vpack.c.bf16 %v2921_v39, %v2919_v38  ;;  %v2838_v49 = vld [vmem:[%s4678_s10 + $0x128] sm:$0xff] }
 0x261   : > { %v1424_v63 = vadd.f32 %v1415_v62, %v762_v57  ;;  %3209 = vmatpush1.bf16.msra.mxu0 %v3208_v60  ;;  %v1521_v1 = vld [vmem:[#allocation2 + $0x58] sm:$0xff]  ;;  %1712 = vmatprep.mubr.f32.mxu1 %v3663_v55  ;;  %v2818_v57 = vld [vmem:[%s4678_s10 + $0x90] sm:$0xff]  ;;  %v2821_v60 = vld [vmem:[%s4678_s10 + $0xa8] sm:$0xff] }
 0x262   : > { %1427 = vst.msk [vmem:[#allocation2 + $0x78] sm:$0xff] %vm851_vm2, %v1425_v61  ;;  %3210 = vmatprep.subr.bf16.mxu0 %v3662_v42  ;;  %v1520_v3 = vld [vmem:[#allocation2 + $0x50] sm:$0xff]  ;;  %v1534_v61 = vpop.permute.xlu1 %1533  ;;  %v2918_v47 = vld [vmem:[%s4678_s10 + $0x380] sm:$0xff]  ;;  %v2923_v51 = vld [vmem:[%s4678_s10 + $0x3a8] sm:$0xff] }
 0x263   : > { %1426 = vst.msk [vmem:[#allocation2 + $0x70] sm:$0xff] %vm851_vm2, %v1424_v63  ;;  %v3118_v4 = vpop.f32.mrb[18].mxu1  ;;  %v3211_v5 = vpack.c.bf16 %v1521_v1, %v1520_v3  ;;  %v2823_v63 = vld [vmem:[%s4678_s10 + $0xb8] sm:$0xff]  ;;  %v2875_v39 = vld [vmem:[%s4678_s10 + $0x240] sm:$0xff] }
 0x264   : > { %v1507_v6 = vadd.f32 %v3118_v4, %v765_v0  ;;  %v1497_v7 = vpop.f32.mrb[19].mxu1  ;;  %v2889_v0 = vld [vmem:[%s4678_s10 + $0x2a8] sm:$0xff]  ;;  %v2891_v1 = vld [vmem:[%s4678_s10 + $0x2b8] sm:$0xff]  ;;  %v3240_v4 = vpack.c.bf16 %v2818_v57, %v2816_v56  ;;  %v2837_v56 = vld [vmem:[%s4678_s10 + $0x120] sm:$0xff] }
 0x265   : > { %v1506_v8 = vadd.f32 %v1497_v7, %v764_v2  ;;  %3212 = vmatpush1.bf16.msra.mxu0 %v3211_v5  ;;  %v1523_v9 = vld [vmem:[#allocation2 + $0x68] sm:$0xff]  ;;  %v3304_v5 = vpack.c.bf16 %v2886_v59, %v2884_v58  ;;  %v2822_v7 = vld [vmem:[%s4678_s10 + $0xb0] sm:$0xff]  ;;  %v2925_v52 = vld [vmem:[%s4678_s10 + $0x3b8] sm:$0xff]  ;;  %v3258_v58 = vpack.c.bf16 %v2840_v50, %v2838_v49 }
 0x266   : > { %1509 = vst.msk [vmem:[#allocation2 + $0x88] sm:$0xff] %vm851_vm2, %v1507_v6  ;;  %3213 = vmatprep.subr.bf16.mxu0 %v3662_v42  ;;  %v1522_v10 = vld [vmem:[#allocation2 + $0x60] sm:$0xff]  ;;  %v2839_v57 = vld [vmem:[%s4678_s10 + $0x130] sm:$0xff]  ;;  %v3338_v59 = vpack.c.bf16 %v2925_v52, %v2923_v51  ;;  %v2870_v24 = vld [vmem:[%s4678_s10 + $0x218] sm:$0xff] }
 0x267   : > { %1508 = vst.msk [vmem:[#allocation2 + $0x80] sm:$0xff] %vm851_vm2, %v1506_v8  ;;  %v3214_v11 = vpack.c.bf16 %v1523_v9, %v1522_v10  ;;  %v2820_v6 = vld [vmem:[%s4678_s10 + $0xa0] sm:$0xff]  ;;  %v3242_v9 = vpack.c.bf16 %v2823_v63, %v2821_v60  ;;  %v3306_v10 = vpack.c.bf16 %v2891_v1, %v2889_v0  ;;  %v2844_v63 = vld [vmem:[%s4678_s10 + $0x158] sm:$0xff]  ;;  %v2927_v0 = vld [vmem:[%s4678_s10 + $0x3c8] sm:$0xff] }
 0x268   : > { %v2922_v60 = vld [vmem:[%s4678_s10 + $0x3a0] sm:$0xff]  ;;  %v2929_v1 = vld [vmem:[%s4678_s10 + $0x3d8] sm:$0xff] }
 0x269   : > { %3215 = vmatpush1.bf16.msra.mxu0 %v3214_v11  ;;  %v1525_v12 = vld [vmem:[#allocation2 + $0x78] sm:$0xff]  ;;  %v2888_v11 = vld [vmem:[%s4678_s10 + $0x2a0] sm:$0xff] }
 0x26a   : > { %3216 = vmatprep.subr.bf16.mxu0 %v3662_v42  ;;  %v1524_v13 = vld [vmem:[#allocation2 + $0x70] sm:$0xff]  ;;  %v2878_v36 = vld [vmem:[%s4678_s10 + $0x258] sm:$0xff]  ;;  %v2901_v52 = vld [vmem:[%s4678_s10 + $0x300] sm:$0xff] }
 0x26b   : > { %v3217_v14 = vpack.c.bf16 %v1525_v12, %v1524_v13  ;;  %v2890_v12 = vld [vmem:[%s4678_s10 + $0x2b0] sm:$0xff]  ;;  %v2825_v13 = vld [vmem:[%s4678_s10 + $0xc8] sm:$0xff]  ;;  %v2904_v49 = vld [vmem:[%s4678_s10 + $0x318] sm:$0xff] }
 0x26d   : > { %3218 = vmatpush1.bf16.msra.mxu0 %v3217_v14  ;;  %v1527_v17 = vld [vmem:[#allocation2 + $0x88] sm:$0xff]  ;;  %v2827_v14 = vld [vmem:[%s4678_s10 + $0xd8] sm:$0xff] }
 0x26e   : > { %3219 = vmatprep.subr.bf16.mxu0 %v3662_v42  ;;  %v1526_v18 = vld [vmem:[#allocation2 + $0x80] sm:$0xff]  ;;  %v3246_v21 = vpack.c.bf16 %v2827_v14, %v2825_v13  ;;  %v2931_v13 = vld [vmem:[%s4678_s10 + $0x3e8] sm:$0xff]  ;;  %v2933_v14 = vld [vmem:[%s4678_s10 + $0x3f8] sm:$0xff] }
 0x26f   : > { %v3220_v22 = vpack.c.bf16 %v1527_v17, %v1526_v18  ;;  %v1528_v42 = vld [vmem:[%s4673_s5] sm:$0xff]  ;;  %v3244_v17 = vpack.c.bf16 %v2822_v7, %v2820_v6  ;;  %v3308_v18 = vpack.c.bf16 %v2890_v12, %v2888_v11  ;;  %v3342_v7 = vpack.c.bf16 %v2929_v1, %v2927_v0  ;;  %v2846_v11 = vld [vmem:[%s4678_s10 + $0x168] sm:$0xff]  ;;  %v2848_v12 = vld [vmem:[%s4678_s10 + $0x178] sm:$0xff] }
 0x270   : > { %v2909_v1 = vld [vmem:[%s4678_s10 + $0x340] sm:$0xff] }
 0x271   : > { %3221 = vmatpush1.bf16.msra.mxu0 %v3220_v22  ;;  %v3310_v22 = vpack.c.bf16 %v2895_v16, %v2893_v15 }
 0x272   : > { %3271 = vmatprep.subr.bf16.mxu0 %v3270_v19  ;;  %v2824_v19 = vld [vmem:[%s4678_s10 + $0xc0] sm:$0xff] }
 0x273   : > { %v3248_v28 = vpack.c.bf16 %v2826_v20, %v2824_v19  ;;  %v3346_v19 = vpack.c.bf16 %v2933_v14, %v2931_v13  ;;  %v2847_v20 = vld [vmem:[%s4678_s10 + $0x170] sm:$0xff]  ;;  %v2935_v14 = vld [vmem:[%s4678_s10 + $0x400] sm:$0xff] }
 0x274   : > { %1604 = vmatmul.mubr.f32.vlgmr.msra.gmra.mrb[4].mxu0 %v1528_v42  ;;  %v2829_v42 = vld [vmem:[%s4678_s10 + $0xe8] sm:$0xff] }
 0x275   : > { %3273 = vmatpush1.bf16.msra.mxu0 %v3272_v25  ;;  %1988 = vmatprep.mubr.f32.mxu0 %v3663_v55  ;;  %v2831_v25 = vld [vmem:[%s4678_s10 + $0xf8] sm:$0xff] }
 0x276   : > { %3275 = vmatprep.subr.bf16.mxu0 %v3274_v26  ;;  %v2897_v26 = vld [vmem:[%s4678_s10 + $0x2e8] sm:$0xff] }
 0x277   : > { %v3314_v33 = vpack.c.bf16 %v2899_v27, %v2897_v26  ;;  %v3286_v26 = vpack.c.bf16 %v2870_v24, %v2868_v23  ;;  %v2867_v27 = vld [vmem:[%s4678_s10 + $0x200] sm:$0xff]  ;;  %v2946_v23 = vld [vmem:[%s4678_s10 + $0x458] sm:$0xff] }
 0x279   : > { %3277 = vmatpush1.bf16.msra.mxu0 %v3276_v31  ;;  %v2830_v31 = vld [vmem:[%s4678_s10 + $0xf0] sm:$0xff] }
 0x27a   : > { %3279 = vmatprep.subr.bf16.mxu0 %v3278_v32  ;;  %v3250_v32 = vpack.c.bf16 %v2831_v25, %v2829_v42  ;;  %v3252_v40 = vpack.c.bf16 %v2830_v31, %v2828_v30  ;;  %v2874_v30 = vld [vmem:[%s4678_s10 + $0x238] sm:$0xff] }
 0x27d   : > { %3281 = vmatpush1.bf16.msra.mxu0 %v3280_v35  ;;  %v2898_v35 = vld [vmem:[%s4678_s10 + $0x2f0] sm:$0xff] }
 0x27e   : > { %3283 = vmatprep.subr.bf16.mxu0 %v3282_v44  ;;  %v3316_v41 = vpack.c.bf16 %v2898_v35, %v2896_v34  ;;  %v2835_v44 = vld [vmem:[%s4678_s10 + $0x110] sm:$0xff]  ;;  %v2876_v35 = vld [vmem:[%s4678_s10 + $0x248] sm:$0xff] }
 0x27f   : > { %v3256_v53 = vpack.c.bf16 %v2835_v44, %v2833_v43  ;;  %v2873_v34 = vld [vmem:[%s4678_s10 + $0x230] sm:$0xff]  ;;  %v3294_v38 = vpack.c.bf16 %v2878_v36, %v2876_v35  ;;  %v2882_v43 = vld [vmem:[%s4678_s10 + $0x278] sm:$0xff] }
 0x281   : > { %3285 = vmatpush1.bf16.msra.mxu0 %v3284_v48  ;;  %v2920_v48 = vld [vmem:[%s4678_s10 + $0x390] sm:$0xff] }
 0x282   : > { %3303 = vmatprep.subr.bf16.mxu0 %v3302_v54  ;;  %v3336_v54 = vpack.c.bf16 %v2920_v48, %v2918_v47  ;;  %v2881_v47 = vld [vmem:[%s4678_s10 + $0x270] sm:$0xff]  ;;  %v2902_v48 = vld [vmem:[%s4678_s10 + $0x308] sm:$0xff] }
 0x283   : > { %v3318_v51 = vpack.c.bf16 %v2904_v49, %v2902_v48 }
 0x347   : > { %v1605_v62 = vpop.f32.mrb[4].mxu0 }
 0x348   : > { %v1606_v2 = vadd.f32 %v1605_v62, %v1534_v61  ;;  %v1607_v3 = vpop.f32.mrb[5].mxu0  ;;  %v2924_v61 = vld [vmem:[%s4678_s10 + $0x3b0] sm:$0xff]  ;;  %v2842_v62 = vld [vmem:[%s4678_s10 + $0x148] sm:$0xff] }
 0x349   : > { %v3340_v3 = vpack.c.bf16 %v2924_v61, %v2922_v60  ;;  %v3262_v6 = vpack.c.bf16 %v2844_v63, %v2842_v62  ;;  %v2907_v60 = vld [vmem:[%s4678_s10 + $0x330] sm:$0xff]  ;;  %v2910_v61 = vld [vmem:[%s4678_s10 + $0x348] sm:$0xff]  ;;  %v2912_v62 = vld [vmem:[%s4678_s10 + $0x358] sm:$0xff] }
 0x34a   : > { %v4198_v8 = vmax.f32 %v1606_v2, 0.0  ;;  %v3260_v2 = vpack.c.bf16 %v2839_v57, %v2837_v56  ;;  %v2908_v56 = vld [vmem:[%s4678_s10 + $0x338] sm:$0xff]  ;;  %v3326_v0 = vpack.c.bf16 %v2912_v62, %v2910_v61 }
 0x34c   : > { %2815 = vmatmul.mubr.msk.f32.vlgmr.msra.gmra.mrb[20].mxu1 %vm851_vm2, %v4198_v8  ;;  %2866 = vmatmul.mubr.msk.f32.vlgmr.msra.gmra.mrb[6].mxu0 %vm851_vm2, %v4198_v8  ;;  %1610 = vst.msk [vmem:[%s4222_s13] sm:$0xff] %vm851_vm2, %v4198_v8 }
 0x34d   : > { %3241 = vmatpush1.bf16.msra.mxu1 %v3240_v4  ;;  %3305 = vmatpush1.bf16.msra.mxu0 %v3304_v5  ;;  %v2841_v4 = vld [vmem:[%s4678_s10 + $0x140] sm:$0xff]  ;;  %v2843_v5 = vld [vmem:[%s4678_s10 + $0x150] sm:$0xff] }
 0x34e   : > { %3243 = vmatprep.subr.bf16.mxu1 %v3242_v9  ;;  %3307 = vmatprep.subr.bf16.mxu0 %v3306_v10  ;;  %v2926_v9 = vld [vmem:[%s4678_s10 + $0x3c0] sm:$0xff]  ;;  %v2928_v10 = vld [vmem:[%s4678_s10 + $0x3d0] sm:$0xff]  ;;  %v3264_v15 = vpack.c.bf16 %v2843_v5, %v2841_v4  ;;  %v2916_v4 = vld [vmem:[%s4678_s10 + $0x378] sm:$0xff] }
 0x34f   : > { %1804 = vmatprep.mubr.f32.mxu1 %v3663_v55  ;;  %2172 = vmatprep.mubr.f32.mxu0 %v3663_v55  ;;  %v3344_v16 = vpack.c.bf16 %v2928_v10, %v2926_v9  ;;  %v2915_v9 = vld [vmem:[%s4678_s10 + $0x370] sm:$0xff]  ;;  %v2936_v10 = vld [vmem:[%s4678_s10 + $0x408] sm:$0xff] }
 0x351   : > { %3245 = vmatpush1.bf16.msra.mxu1 %v3244_v17  ;;  %3309 = vmatpush1.bf16.msra.mxu0 %v3308_v18  ;;  %v2845_v17 = vld [vmem:[%s4678_s10 + $0x160] sm:$0xff]  ;;  %v3266_v18 = vpack.c.bf16 %v2848_v12, %v2846_v11  ;;  %v2938_v11 = vld [vmem:[%s4678_s10 + $0x418] sm:$0xff] }
 0x352   : > { %3247 = vmatprep.subr.bf16.mxu1 %v3246_v21  ;;  %3311 = vmatprep.subr.bf16.mxu0 %v3310_v22  ;;  %v2930_v21 = vld [vmem:[%s4678_s10 + $0x3e0] sm:$0xff]  ;;  %v2932_v22 = vld [vmem:[%s4678_s10 + $0x3f0] sm:$0xff]  ;;  %v3268_v42 = vpack.c.bf16 %v2847_v20, %v2845_v17  ;;  %v3350_v13 = vpack.c.bf16 %v2938_v11, %v2936_v10  ;;  %v2942_v17 = vld [vmem:[%s4678_s10 + $0x438] sm:$0xff] }
 0x353   : > { %v3348_v25 = vpack.c.bf16 %v2932_v22, %v2930_v21  ;;  %v2939_v20 = vld [vmem:[%s4678_s10 + $0x420] sm:$0xff]  ;;  %v2941_v21 = vld [vmem:[%s4678_s10 + $0x430] sm:$0xff]  ;;  %v2944_v22 = vld [vmem:[%s4678_s10 + $0x448] sm:$0xff] }
 0x354   : > { %v3356_v24 = vpack.c.bf16 %v2941_v21, %v2939_v20 }
 0x355   : > { %3249 = vmatpush1.bf16.msra.mxu1 %v3248_v28  ;;  %3313 = vmatpush1.bf16.msra.mxu0 %v3312_v29  ;;  %v2869_v28 = vld [vmem:[%s4678_s10 + $0x210] sm:$0xff]  ;;  %v2872_v29 = vld [vmem:[%s4678_s10 + $0x228] sm:$0xff] }
 0x356   : > { %3251 = vmatprep.subr.bf16.mxu1 %v3250_v32  ;;  %3315 = vmatprep.subr.bf16.mxu0 %v3314_v33  ;;  %v3288_v31 = vpack.c.bf16 %v2869_v28, %v2867_v27  ;;  %v3290_v32 = vpack.c.bf16 %v2874_v30, %v2872_v29  ;;  %v2871_v33 = vld [vmem:[%s4678_s10 + $0x220] sm:$0xff]  ;;  %v2948_v27 = vld [vmem:[%s4678_s10 + $0x468] sm:$0xff]  ;;  %v2950_v28 = vld [vmem:[%s4678_s10 + $0x478] sm:$0xff] }
 0x357   : > { %v3292_v37 = vpack.c.bf16 %v2873_v34, %v2871_v33  ;;  %v3362_v29 = vpack.c.bf16 %v2950_v28, %v2948_v27  ;;  %v2947_v30 = vld [vmem:[%s4678_s10 + $0x460] sm:$0xff] }
 0x358   : > { %v1627_v27 = vld [vmem:[%s3884_s11 + $0x80] sm:$0xff] }
 0x359   : > { %3253 = vmatpush1.bf16.msra.mxu1 %v3252_v40  ;;  %3317 = vmatpush1.bf16.msra.mxu0 %v3316_v41  ;;  %v2877_v40 = vld [vmem:[%s4678_s10 + $0x250] sm:$0xff]  ;;  %v2880_v41 = vld [vmem:[%s4678_s10 + $0x268] sm:$0xff] }
 0x35a   : > { %3255 = vmatprep.subr.bf16.mxu1 %v3254_v45  ;;  %3335 = vmatprep.subr.bf16.mxu0 %v3334_v46  ;;  %v3296_v44 = vpack.c.bf16 %v2877_v40, %v2875_v39  ;;  %v3298_v45 = vpack.c.bf16 %v2882_v43, %v2880_v41  ;;  %v2879_v46 = vld [vmem:[%s4678_s10 + $0x260] sm:$0xff]  ;;  %v1612_v39 = vld [vmem:[%s3884_s11 + $0x8] sm:$0xff]  ;;  %v1614_v40 = vld [vmem:[%s3884_s11 + $0x18] sm:$0xff] }
 0x35b   : > { %v3300_v50 = vpack.c.bf16 %v2881_v47, %v2879_v46 }
 0x35c   : > { %2832 = vmatmul.mubr.msk.f32.vlgmr.msra.gmra.mrb[22].mxu1 %vm851_vm2, %v4198_v8  ;;  %2900 = vmatmul.mubr.msk.f32.vlgmr.msra.gmra.mrb[8].mxu0 %vm851_vm2, %v4198_v8 }
 0x35d   : > { %3257 = vmatpush1.bf16.msra.mxu1 %v3256_v53  ;;  %3337 = vmatpush1.bf16.msra.mxu0 %v3336_v54  ;;  %v2903_v53 = vld [vmem:[%s4678_s10 + $0x310] sm:$0xff]  ;;  %v2906_v54 = vld [vmem:[%s4678_s10 + $0x328] sm:$0xff] }
 0x35e   : > { %3259 = vmatprep.subr.bf16.mxu1 %v3258_v58  ;;  %3339 = vmatprep.subr.bf16.mxu0 %v3338_v59  ;;  %v3320_v57 = vpack.c.bf16 %v2903_v53, %v2901_v52  ;;  %v3322_v58 = vpack.c.bf16 %v2908_v56, %v2906_v54  ;;  %v2905_v59 = vld [vmem:[%s4678_s10 + $0x320] sm:$0xff]  ;;  %v1618_v53 = vld [vmem:[%s3884_s11 + $0x38] sm:$0xff]  ;;  %v1616_v54 = vld [vmem:[%s3884_s11 + $0x28] sm:$0xff] }
 0x35f   : > { %1896 = vmatprep.mubr.f32.mxu1 %v3663_v55  ;;  %2356 = vmatprep.mubr.f32.mxu0 %v3663_v55  ;;  %v3324_v63 = vpack.c.bf16 %v2907_v60, %v2905_v59  ;;  %v1615_v52 = vld [vmem:[%s3884_s11 + $0x20] sm:$0xff] }
 0x361   : > { %3261 = vmatpush1.bf16.msra.mxu1 %v3260_v2  ;;  %3341 = vmatpush1.bf16.msra.mxu0 %v3340_v3  ;;  %v2911_v2 = vld [vmem:[%s4678_s10 + $0x350] sm:$0xff]  ;;  %v2914_v3 = vld [vmem:[%s4678_s10 + $0x368] sm:$0xff] }
 0x362   : > { %3263 = vmatprep.subr.bf16.mxu1 %v3262_v6  ;;  %3343 = vmatprep.subr.bf16.mxu0 %v3342_v7  ;;  %v3328_v5 = vpack.c.bf16 %v2911_v2, %v2909_v1  ;;  %v3330_v6 = vpack.c.bf16 %v2916_v4, %v2914_v3  ;;  %v2913_v7 = vld [vmem:[%s4678_s10 + $0x360] sm:$0xff]  ;;  %v1622_v4 = vld [vmem:[%s3884_s11 + $0x58] sm:$0xff] }
 0x363   : > { %v3332_v12 = vpack.c.bf16 %v2915_v9, %v2913_v7  ;;  %v1621_v2 = vld [vmem:[%s3884_s11 + $0x50] sm:$0xff]  ;;  %v1619_v3 = vld [vmem:[%s3884_s11 + $0x40] sm:$0xff] }
 0x365   : > { %3265 = vmatpush1.bf16.msra.mxu1 %v3264_v15  ;;  %3345 = vmatpush1.bf16.msra.mxu0 %v3344_v16  ;;  %v2937_v15 = vld [vmem:[%s4678_s10 + $0x410] sm:$0xff]  ;;  %v2940_v16 = vld [vmem:[%s4678_s10 + $0x428] sm:$0xff] }
 0x366   : > { %3267 = vmatprep.subr.bf16.mxu1 %v3266_v18  ;;  %3347 = vmatprep.subr.bf16.mxu0 %v3346_v19  ;;  %v3352_v18 = vpack.c.bf16 %v2937_v15, %v2935_v14  ;;  %v3354_v19 = vpack.c.bf16 %v2942_v17, %v2940_v16  ;;  %v1625_v15 = vld [vmem:[%s3884_s11 + $0x70] sm:$0xff]  ;;  %v1623_v16 = vld [vmem:[%s3884_s11 + $0x60] sm:$0xff]  ;;  %v1626_v17 = vld [vmem:[%s3884_s11 + $0x78] sm:$0xff] }
 0x369   : > { %3269 = vmatpush1.bf16.msra.mxu1 %v3268_v42  ;;  %3349 = vmatpush1.bf16.msra.mxu0 %v3348_v25  ;;  %v3358_v42 = vpack.c.bf16 %v2946_v23, %v2944_v22  ;;  %v2943_v25 = vld [vmem:[%s4678_s10 + $0x440] sm:$0xff] }
 0x36a   : > { %3287 = vmatprep.subr.bf16.mxu1 %v3286_v26  ;;  %v2945_v26 = vld [vmem:[%s4678_s10 + $0x450] sm:$0xff] }
 0x36c   : > { %2849 = vmatmul.mubr.msk.f32.vlgmr.msra.gmra.mrb[24].mxu1 %vm851_vm2, %v4198_v8  ;;  %2934 = vmatmul.mubr.msk.f32.vlgmr.msra.gmra.mrb[10].mxu0 %vm851_vm2, %v4198_v8 }
 0x36d   : > { %3289 = vmatpush1.bf16.msra.mxu1 %v3288_v31  ;;  %2080 = vmatprep.mubr.f32.mxu1 %v3663_v55  ;;  %v2949_v31 = vld [vmem:[%s4678_s10 + $0x470] sm:$0xff] }
 0x36e   : > { %3291 = vmatprep.subr.bf16.mxu1 %v3290_v32  ;;  %2552 = vmatprep.mubr.f32.mxu0 %v3663_v55  ;;  %v3364_v32 = vpack.c.bf16 %v2949_v31, %v2947_v30  ;;  %v2477_v31 = vld [vmem:[%s4675_s7] sm:$0xff] }
 0x371   : > { %3293 = vmatpush1.bf16.msra.mxu1 %v3292_v37  ;;  %v1611_v37 = vld [vmem:[%s3884_s11] sm:$0xff] }
 0x372   : > { %3295 = vmatprep.subr.bf16.mxu1 %v3294_v38  ;;  %v1613_v38 = vld [vmem:[%s3884_s11 + $0x10] sm:$0xff] }
 0x375   : > { %3297 = vmatpush1.bf16.msra.mxu1 %v3296_v44 }
 0x376   : > { %3299 = vmatprep.subr.bf16.mxu1 %v3298_v45 }
 0x379   : > { %3301 = vmatpush1.bf16.msra.mxu1 %v3300_v50 }
 0x37a   : > { %3319 = vmatprep.subr.bf16.mxu1 %v3318_v51  ;;  %v1617_v51 = vld [vmem:[%s3884_s11 + $0x30] sm:$0xff] }
 0x37c   : > { %2883 = vmatmul.mubr.msk.f32.vlgmr.msra.gmra.mrb[26].mxu1 %vm851_vm2, %v4198_v8 }
 0x37d   : > { %3321 = vmatpush1.bf16.msra.mxu1 %v3320_v57  ;;  %2264 = vmatprep.mubr.f32.mxu1 %v3663_v55 }
 0x37e   : > { %3323 = vmatprep.subr.bf16.mxu1 %v3322_v58 }
 0x381   : > { %3325 = vmatpush1.bf16.msra.mxu1 %v3324_v63 }
 0x382   : > { %3327 = vmatprep.subr.bf16.mxu1 %v3326_v0 }
 0x385   : > { %3329 = vmatpush1.bf16.msra.mxu1 %v3328_v5  ;;  %v1620_v5 = vld [vmem:[%s3884_s11 + $0x48] sm:$0xff] }
 0x386   : > { %3331 = vmatprep.subr.bf16.mxu1 %v3330_v6 }
 0x389   : > { %3333 = vmatpush1.bf16.msra.mxu1 %v3332_v12 }
 0x38a   : > { %3351 = vmatprep.subr.bf16.mxu1 %v3350_v13 }
 0x38c   : > { %2917 = vmatmul.mubr.msk.f32.vlgmr.msra.gmra.mrb[28].mxu1 %vm851_vm2, %v4198_v8 }
 0x38d   : > { %3353 = vmatpush1.bf16.msra.mxu1 %v3352_v18  ;;  %2448 = vmatprep.mubr.f32.mxu1 %v3663_v55  ;;  %v3360_v55 = vpack.c.bf16 %v2945_v26, %v2943_v25  ;;  %v1624_v18 = vld [vmem:[%s3884_s11 + $0x68] sm:$0xff] }
 0x38e   : > { %3355 = vmatprep.subr.bf16.mxu1 %v3354_v19  ;;  %v1628_v26 = vld [vmem:[%s3884_s11 + $0x88] sm:$0xff] }
 0x391   : > { %3357 = vmatpush1.bf16.msra.mxu1 %v3356_v24 }
 0x392   : > { %3359 = vmatprep.subr.bf16.mxu1 %v3358_v42 }
 0x395   : > { %3361 = vmatpush1.bf16.msra.mxu1 %v3360_v55 }
 0x396   : > { %3363 = vmatprep.subr.bf16.mxu1 %v3362_v29 }
 0x399   : > { %3365 = vmatpush1.bf16.msra.mxu1 %v3364_v32 }
 0x39c   : > { %2951 = vmatmul.mubr.msk.f32.vlgmr.msra.gmra.mrb[30].mxu1 %vm851_vm2, %v4198_v8 }
 0x41f   : > { %v1714_v33 = vpop.f32.mrb[20].mxu1  ;;  %v1990_v34 = vpop.f32.mrb[6].mxu0 }
 0x420   : > { %v1716_v35 = vpop.f32.mrb[21].mxu1  ;;  %v1992_v36 = vpop.f32.mrb[7].mxu0  ;;  %v1719_v44 = vadd.f32 %v1714_v33, %v1611_v37  ;;  %v1995_v58 = vadd.f32 %v1990_v34, %v1617_v51 }
 0x421   : > { %v1720_v48 = vadd.f32 %v1716_v35, %v1612_v39  ;;  %v1996_v62 = vadd.f32 %v1992_v36, %v1618_v53 }
 0x42f   : > { %v1806_v41 = vpop.f32.mrb[22].mxu1  ;;  %v2174_v43 = vpop.f32.mrb[8].mxu0 }
 0x430   : > { %v1811_v45 = vadd.f32 %v1806_v41, %v1613_v38  ;;  %v1808_v46 = vpop.f32.mrb[23].mxu1  ;;  %v2176_v47 = vpop.f32.mrb[9].mxu0  ;;  %v2179_v7 = vadd.f32 %v2174_v43, %v1621_v2 }
 0x431   : > { %v1812_v8 = vadd.f32 %v1808_v46, %v1614_v40  ;;  %v2180_v11 = vadd.f32 %v2176_v47, %v1622_v4 }
 0x432   : > { %v3368_v49 = vpack.c.bf16 %v1811_v45, %v1719_v44 }
 0x433   : > { %v3366_v50 = vpack.c.bf16 %v1812_v8, %v1720_v48 }
 0x435   : > { %3367 = vmatprep.subr.bf16.mxu0 %v3366_v50 }
 0x436   : > { %3369 = vmatpush1.bf16.msra.mxu0 %v3368_v49 }
 0x43f   : > { %v1898_v56 = vpop.f32.mrb[24].mxu1  ;;  %v2358_v57 = vpop.f32.mrb[10].mxu0 }
 0x440   : > { %v1903_v59 = vadd.f32 %v1898_v56, %v1615_v52  ;;  %v1900_v60 = vpop.f32.mrb[25].mxu1  ;;  %v2360_v61 = vpop.f32.mrb[11].mxu0  ;;  %v2363_v20 = vadd.f32 %v2358_v57, %v1625_v15 }
 0x441   : > { %v1904_v63 = vadd.f32 %v1900_v60, %v1616_v54  ;;  %v2364_v23 = vadd.f32 %v2360_v61, %v1626_v17 }
 0x442   : > { %v3372_v0 = vpack.c.bf16 %v1995_v58, %v1903_v59 }
 0x443   : > { %v3370_v1 = vpack.c.bf16 %v1996_v62, %v1904_v63 }
 0x445   : > { %3371 = vmatprep.subr.bf16.mxu0 %v3370_v1 }
 0x446   : > { %3373 = vmatpush1.bf16.msra.mxu0 %v3372_v0 }
 0x44f   : > { %v2082_v6 = vpop.f32.mrb[26].mxu1 }
 0x450   : > { %v2087_v9 = vadd.f32 %v2082_v6, %v1619_v3  ;;  %v2084_v10 = vpop.f32.mrb[27].mxu1 }
 0x451   : > { %v2088_v12 = vadd.f32 %v2084_v10, %v1620_v5 }
 0x452   : > { %v3376_v13 = vpack.c.bf16 %v2179_v7, %v2087_v9 }
 0x453   : > { %v3374_v14 = vpack.c.bf16 %v2180_v11, %v2088_v12 }
 0x455   : > { %3375 = vmatprep.subr.bf16.mxu0 %v3374_v14 }
 0x456   : > { %3377 = vmatpush1.bf16.msra.mxu0 %v3376_v13 }
 0x45f   : > { %v2266_v19 = vpop.f32.mrb[28].mxu1 }
 0x460   : > { %v2271_v21 = vadd.f32 %v2266_v19, %v1623_v16  ;;  %v2268_v22 = vpop.f32.mrb[29].mxu1 }
 0x461   : > { %v2272_v24 = vadd.f32 %v2268_v22, %v1624_v18 }
 0x462   : > { %v3380_v42 = vpack.c.bf16 %v2363_v20, %v2271_v21 }
 0x463   : > { %v3378_v25 = vpack.c.bf16 %v2364_v23, %v2272_v24 }
 0x465   : > { %3379 = vmatprep.subr.bf16.mxu0 %v3378_v25 }
 0x466   : > { %3381 = vmatpush1.bf16.msra.mxu0 %v3380_v42 }
 0x46f   : > { %v2450_v28 = vpop.f32.mrb[30].mxu1 }
 0x470   : > { %v2452_v55 = vpop.f32.mrb[31].mxu1  ;;  %v2455_v30 = vadd.f32 %v2450_v28, %v1627_v27 }
 0x471   : > { %v2456_v29 = vadd.f32 %v2452_v55, %v1628_v26 }
 0x473   : > { %2504 = vmatprep.subr.mxu0 %v2456_v29 }
 0x474   : > { %2505 = vmatpush1.msra.mxu0 %v2455_v30 }
 0x475   : > { %2952 = vmatmul.mubr.msk.f32.vlgmr.msra.gmra.mrb[12].mxu0 %vm2484_vm3, %v2477_v31 }
 0x476   : > { %3536 = shalt.err (!%p3533_p9)
}
 0x477   : > { %s3537_s13 = scalar_lea.hbm %s4554_s21, 128  ;;  %s3541_s11 = scalar_lea.hbm %s4717_s24, 256 }
 0x478   : > { %p3538_p2 = scmp.ne.s32.totalorder %s4554_s21, %s3537_s13  ;;  %p3542_p11 = scmp.lt.u32.totalorder %s4554_s21, %s4717_s24 }
 0x479   : > { %p3543_p1 = scmp.lt.u32.totalorder %s3541_s11, %s3537_s13  ;;  %p3545_p6 = scmp.lt.u32.totalorder %s3537_s13, %s4554_s21 }
 0x47a   : > { %p3539_p0 = pnand %p3538_p2, %p3832_p12 }
 0x47b   : > { %p3544_p4 = por %p3543_p1, %p3542_p11 }
 0x47c   : > { %p3540_p5 = pneg %p3539_p0 }
 0x47d   : > { %p3546_p8 = por %p3545_p6, %p3544_p4 }
 0x47f   : > { %p3547_p10 = pnand %p3546_p8, %p3540_p5 }
 0x481   : > { %3550 = shalt.err (!%p3547_p10)
}
 0x482   : > { %3394 = dma.vmem_to_hbm [thread:$0]  (%p3832_p12), %s4557_s17, 128, %s4554_s21, %s4560_s0  }
 0x483   : > { %s4718_s25 = sld [smem:[#allocation23_spill]]  ;;  %s2564_s16 = scalar_lea.sflag [#allocation6], %s3880_s15 }
 0x484   : > { %s3551_s11 = scalar_lea.vmem %s4549_s22, 256  ;;  %s3665_s30 = smov [#allocation9]  }
 0x485   : > { %p3552_p13 = scmp.ne.s32.totalorder %s4549_s22, %s3551_s11  ;;  %s3555_s12 = sshll.u32 %s3665_s30, 4  ;;  %s3556_s12 = int_to_ptr.vmem [resolvable:$false] %s3555_s12 }
 0x486   : > { %s3557_s1 = scalar_lea.vmem %s3556_s12, 512  ;;  %p3558_p9 = scmp.lt.s32.totalorder %s4549_s22, %s3556_s12 }
 0x487   : > { %p3553_p3 = pnand %p3552_p13, %p3832_p12  ;;  %p3559_p2 = scmp.lt.s32.totalorder %s3557_s1, %s3551_s11 }
 0x489   : > { %s4719_s18 = smov %s4718_s25  ;;  %s4589_s13 = scalar_lea.hbm %s4718_s25, %s2963_s19 }
 0x48a   : > { %p3554_p7 = pneg %p3553_p3  ;;  %p3560_p0 = por %p3559_p2, %p3558_p9 }
 0x48c   : > { %p3561_p5 = pnand %p3560_p0, %p3554_p7 }
 0x48e   : > { %3564 = shalt.err (!%p3561_p5)
}
 0x48f   : > { %s3565_s21 = scalar_lea.hbm %s4589_s13, 256  ;;  %s3569_s9 = scalar_lea.hbm %s4719_s18, 512 }
 0x490   : > { %p3566_p11 = scmp.ne.s32.totalorder %s4589_s13, %s3565_s21  ;;  %p3570_p6 = scmp.lt.u32.totalorder %s4589_s13, %s4719_s18 }
 0x491   : > { %p3571_p8 = scmp.lt.u32.totalorder %s3569_s9, %s3565_s21  ;;  %p3573_p13 = scmp.lt.u32.totalorder %s3565_s21, %s4589_s13 }
 0x492   : > { %p3567_p1 = pnand %p3566_p11, %p3832_p12 }
 0x493   : > { %p3572_p10 = por %p3571_p8, %p3570_p6 }
 0x494   : > { %p3568_p4 = pneg %p3567_p1 }
 0x495   : > { %p3574_p3 = por %p3573_p13, %p3572_p10 }
 0x497   : > { %p3575_p7 = pnand %p3574_p3, %p3568_p4 }
 0x499   : > { %3578 = shalt.err (!%p3575_p7)
}
 0x49a   : > { %s3666_s1 = smov 128   ;;  %s3667_s11 = smov 8   ;;  %v2482_v32 = vpop.permute.xlu1 %2481 }
 0x49b   : > { %3393 = dma.vmem_to_hbm [thread:$0]  (%p3832_p12), %s4549_s22, 256, %s4589_s13, %s2564_s16, %s3666_s1, %s3666_s1, %s3667_s11  }
 0x49c   : > { %s4720_s12 = sshll.u32 %s3880_s15, 4  ;;  %s4721_s22 = sld [smem:[#allocation25_spill]] }
 0x49d   : > { %s521_s21 = scalar_lea.vmem [#allocation12], %s4720_s12  ;;  %s3668_s16 = smov [#allocation12]  }
 0x49e   : > { %s2617_s17 = sshll.u32 %s521_s21, 4  ;;  %s3583_s25 = sshll.u32 %s3668_s16, 4  ;;  %s4617_s17 = int_to_ptr.vmem [resolvable:$true] %s2617_s17  ;;  %s3584_s25 = int_to_ptr.vmem [resolvable:$false] %s3583_s25 }
 0x49f   : > { %s3579_s15 = scalar_lea.vmem %s4617_s17, 256  ;;  %s3585_s30 = scalar_lea.vmem %s3584_s25, 512 }
 0x4a0   : > { %p3580_p9 = scmp.ne.s32.totalorder %s4617_s17, %s3579_s15  ;;  %p3586_p5 = scmp.lt.s32.totalorder %s4617_s17, %s3584_s25 }
 0x4a1   : > { %p3587_p11 = scmp.lt.s32.totalorder %s3585_s30, %s3579_s15 }
 0x4a2   : > { %s4624_s13 = scalar_lea.hbm %s4721_s22, %s2963_s19  ;;  %p3581_p2 = pnand %p3580_p9, %p3832_p12 }
 0x4a3   : > { %p3588_p1 = por %p3587_p11, %p3586_p5 }
 0x4a4   : > { %p3582_p0 = pneg %p3581_p2 }
 0x4a6   : > { %p3589_p4 = pnand %p3588_p1, %p3582_p0 }
 0x548   : > { %v2554_v33 = vpop.f32.mrb[12].mxu0 }
 0x549   : > { %v2555_v34 = vadd.f32 %v2554_v33, %v2482_v32  ;;  %v2556_v35 = vpop.f32.mrb[13].mxu0 }
 0x54a   : > { %v2557_v36 = vadd.f32 %v2556_v35, %v2482_v32 }
 0x54b   : > { %v2559_v37 = vmax.f32 %v2555_v34, 0.0 }
 0x54c   : > { %v2560_v38 = vmax.f32 %v2557_v36, 0.0 }
 0x54d   : > { %2561 = vst [vmem:[%s521_s21] sm:$0xff] %v2559_v37 }
 0x54e   : > { %2562 = vst [vmem:[%s521_s21 + $0x8] sm:$0xff] %v2560_v38 }
 0x54f   : > { %3592 = shalt.err (!%p3589_p4)
}
 0x550   : > { %s3593_s29 = scalar_lea.hbm %s4624_s13, 256  ;;  %s3597_s11 = scalar_lea.hbm %s4721_s22, 512 }
 0x551   : > { %p3594_p6 = scmp.ne.s32.totalorder %s4624_s13, %s3593_s29  ;;  %p3598_p13 = scmp.lt.u32.totalorder %s4624_s13, %s4721_s22 }
 0x552   : > { %p3599_p3 = scmp.lt.u32.totalorder %s3597_s11, %s3593_s29  ;;  %p3601_p9 = scmp.lt.u32.totalorder %s3593_s29, %s4624_s13 }
 0x553   : > { %p3595_p8 = pnand %p3594_p6, %p3832_p12 }
 0x554   : > { %p3600_p7 = por %p3599_p3, %p3598_p13 }
 0x555   : > { %p3596_p10 = pneg %p3595_p8 }
 0x556   : > { %p3602_p2 = por %p3601_p9, %p3600_p7 }
 0x558   : > { %p3603_p0 = pnand %p3602_p2, %p3596_p10 }
 0x55a   : > { %3606 = shalt.err (!%p3603_p0)
}
 0x55b   : > { %3395 = dma.vmem_to_hbm [thread:$0]  (%p3832_p12), %s4617_s17, 256, %s4624_s13, %s4560_s0  }
 0x55c PF: > { %s4722_s14 = sld [smem:[#allocation17_spill]]  ;;  %s4723_s9 = sld [smem:[#allocation18_spill]] }
 0x55d   : > { %p4725_p11 = scmp.ge.s32.totalorder %s3653_s28, 2 }
 0x562   : > { %s2629_s15 = sand.u32 1, %s4722_s14   ;;  %p4724_p5 = scmp.ne.s32.totalorder %s4723_s9, 0 }
 0x563   : > { %s2630_s16 = scalar_lea.sflag [#allocation6], %s2629_s15 }
 0x564   : > { %p3408_p1 = pnand %p4725_p11, %p4724_p5 }
 0x566   : > { %3632 = dma.done.wait (!%p3408_p1), %s2630_s16, 256  }
 0x567   : > { %3634 = vsyncadd (!%p3408_p1), %s2630_s16, 4294967040  ;;  %s4726_s25 = sadd.s32 4294967294, %s3653_s28  }
 0x568   : > { %s2638_s30 = sand.u32 1, %s4726_s25  }
 0x569   : > { %s2639_s29 = scalar_lea.sflag [#allocation11], %s2638_s30 }
 0x56a   : > { %3636 = dma.done.wait (!%p3408_p1), %s2639_s29, 384  }
 0x56b   : > { %3638 = vsyncadd (!%p3408_p1), %s2639_s29, 4294966912  ;;  %s4727_s28 = sld [smem:[#allocation19_spill]]  ;;  %s4728_s25 = smov %s3645_s26 }
 0x56c   : > { %s4729_s26 = smov %s3649_s27  ;;  %s4730_s27 = smov %s3828_s20 }
 0x571   : > { %p31_p12 = scmp.ge.s32.totalorder %s4727_s28, 4  }
 0x573   :  { %33 = sbr.rel (!%p31_p12) target bundleno = 15 (0xf), region = 167 }
 0x57a   :  { %2653 = vsyncpa [#allocation5], 1 }
 0x57b   :  { %2655 = vsyncpa [#allocation5 + $0x1], 1 }
 0x57c   :  { %2656 = vsyncpa [#allocation8], 1 }
 0x57d   :  { %2657 = vsyncpa [#allocation6], 1 }
 0x57e   :  { %2659 = vsyncpa [#allocation6 + $0x1], 1 }
 0x57f   :  { %2660 = vsyncpa [#allocation11], 1 }
 0x580   :  { %2662 = vsyncpa [#allocation11 + $0x1], 1 }

</bundles_post_ra>
